<compile_context>
chip_gen: v7x
topology: tpu7x:2x2x1
jax: 0.10.0
libtpu: 0.0.40
codegen_flags: <defaults>
</compile_context>

<pallas_src>
import jax
import jax.numpy as jnp
from jax.experimental import pallas as pl
from jax.experimental.pallas import tpu as pltpu

SELU_ALPHA = 1.6732632423543772
SELU_SCALE = 1.0507009873554805
BN_EPS = 1e-5
TN_MAX = 512     # lane-tile width for wide layers (multiple of 256 -> feeds 2x256 MXU)
TM_MAX = 256     # batch-tile cap (batch is tiny here, so M is a single block)


def _round_up(v, m):
    return (v + m - 1) // m * m


# ---------------------------------------------------------------------------
# Pallas kernel: one grid step = one (tm, tn) output block with the FULL K
# contraction resident in VMEM.  Inputs are bf16 (MXU-native), accumulation in
# f32.  `s` already folds SELU_SCALE * gamma / sqrt(var+eps); `t` folds
# beta - mean * gamma / sqrt(var+eps).
# ---------------------------------------------------------------------------
def _fused_linear_selu_bn_kernel(x_ref, w_ref, b_ref, s_ref, t_ref, o_ref):
    y = jnp.dot(x_ref[...], w_ref[...], preferred_element_type=jnp.float32)
    y = y + b_ref[...]
    raw = jnp.where(y > 0, y, SELU_ALPHA * (jnp.exp(y) - 1.0))
    o_ref[...] = (raw * s_ref[...] + t_ref[...]).astype(o_ref.dtype)


def fused_linear_selu_bn(x, layer):
    """x: (M, K) float.  layer holds pre-padded bf16 weights + fused BN vectors."""
    w = layer["w_pad"]                         # (Kp, Np) bf16, padded once at init
    Kp, Np = w.shape
    M, K = x.shape
    assert K == layer["k_in"]
    tn = layer["tn"]
    tm = min(_round_up(M, 16), TM_MAX)
    Mp = _round_up(M, tm)

    # Only the (tiny) activation is padded per call; weights were padded at init.
    xp = jnp.zeros((Mp, Kp), jnp.bfloat16).at[:M, :K].set(x.astype(jnp.bfloat16))

    grid = (Mp // tm, Np // tn)
    out = pl.pallas_call(
        _fused_linear_selu_bn_kernel,
        out_shape=jax.ShapeDtypeStruct((Mp, Np), jnp.float32),
        grid_spec=pltpu.PrefetchScalarGridSpec(
            num_scalar_prefetch=0,
            grid=grid,
            in_specs=[
                pl.BlockSpec((tm, Kp), lambda i, j: (i, 0)),   # activations (whole K)
                pl.BlockSpec((Kp, tn), lambda i, j: (0, j)),   # weight slab (whole K)
                pl.BlockSpec((1, tn), lambda i, j: (0, j)),    # bias
                pl.BlockSpec((1, tn), lambda i, j: (0, j)),    # fused scale
                pl.BlockSpec((1, tn), lambda i, j: (0, j)),    # fused shift
            ],
            out_specs=pl.BlockSpec((tm, tn), lambda i, j: (i, j)),
        ),
        compiler_params=pltpu.CompilerParams(
            dimension_semantics=("parallel", "parallel")),
    )(xp, w, layer["b_pad"], layer["scale_pad"], layer["shift_pad"])
    return out[:M, :layer["n_out"]]


# ---------------------------------------------------------------------------
# Parameter construction (shapes match DeepSTABp.__init__; BN in default /
# freshly-initialized eval state).  All padding/casting happens ONCE here.
# ---------------------------------------------------------------------------
def _linear_params(key, d_in, d_out):
    kw, _ = jax.random.split(key)
    w = jax.random.normal(kw, (d_in, d_out), jnp.float32) / jnp.sqrt(float(d_in))
    b = jnp.zeros((d_out,), jnp.float32)
    return {"w": w, "b": b}


def _embedding_block_params(key, dims):
    keys = jax.random.split(key, len(dims) - 1)
    return [_linear_params(k, dims[i], dims[i + 1]) for i, k in enumerate(keys)]


def _padded_fc_layer(key, d_in, d_out):
    lin = _linear_params(key, d_in, d_out)
    # BatchNorm1d default init / fresh running stats: gamma=1, beta=0, mean=0, var=1
    gamma = jnp.ones((d_out,), jnp.float32)
    beta = jnp.zeros((d_out,), jnp.float32)
    mean = jnp.zeros((d_out,), jnp.float32)
    var = jnp.ones((d_out,), jnp.float32)
    inv_std = 1.0 / jnp.sqrt(var + BN_EPS)
    bn_scale = gamma * inv_std
    scale = SELU_SCALE * bn_scale            # fold SELU's lambda into BN scale
    shift = beta - mean * bn_scale

    Kp = _round_up(d_in, 128)
    Np = _round_up(d_out, TN_MAX) if d_out >= TN_MAX else _round_up(d_out, 128)
    tn = min(TN_MAX, Np)

    w_pad = jnp.zeros((Kp, Np), jnp.bfloat16).at[:d_in, :d_out].set(
        lin["w"].astype(jnp.bfloat16))
    b_pad = jnp.zeros((1, Np), jnp.float32).at[0, :d_out].set(lin["b"])
    scale_pad = jnp.zeros((1, Np), jnp.float32).at[0, :d_out].set(scale)
    shift_pad = jnp.zeros((1, Np), jnp.float32).at[0, :d_out].set(shift)
    return {"w_pad": w_pad, "b_pad": b_pad, "scale_pad": scale_pad,
            "shift_pad": shift_pad, "k_in": d_in, "n_out": d_out, "tn": tn}


def init_deepstabp_params(key, use_ogt=True):
    k_cell, k_lys, k_ogt, k_fc = jax.random.split(key, 4)
    emb_dims = [1, 20, 10]
    params = {
        "cell": _embedding_block_params(k_cell, emb_dims),
        "lysate": _embedding_block_params(k_lys, emb_dims),
    }
    dim_fc_input = 1024 + 10 + 10
    if use_ogt:
        params["ogt"] = _embedding_block_params(k_ogt, emb_dims)
        dim_fc_input += 10
    fc_dims = [dim_fc_input, 4098, 512, 256, 128, 1]
    fc_keys = jax.random.split(k_fc, len(fc_dims) - 1)
    # Hidden layers: Linear -> SELU -> BatchNorm1d -> Dropout  (Pallas-fused)
    params["fc_hidden"] = [
        _padded_fc_layer(fc_keys[i], fc_dims[i], fc_dims[i + 1])
        for i in range(len(fc_dims) - 2)
    ]
    # Final 128 -> 1 Linear stays in plain jnp (lane width 1 => masked stores).
    params["fc_last"] = _linear_params(fc_keys[-1], fc_dims[-2], fc_dims[-1])
    return params


# ---------------------------------------------------------------------------
# Forward pass (eval mode)
# ---------------------------------------------------------------------------
def _selu(y):
    return SELU_SCALE * jnp.where(y > 0, y, SELU_ALPHA * jnp.expm1(y))


def _embedding_block_jnp(block_params, x):
    # nn.Linear -> Dropout(eval identity) -> SELU, repeated.  ~600 FLOPs total:
    # plain XLA instead of 3 Pallas launches per block.
    for layer in block_params:
        x = _selu(x @ layer["w"] + layer["b"])
    return x


def _global_mean_pool(node_feat, batch_vector, num_graphs):
    # segment reduction instead of a dense (B x N_nodes) one-hot matmul
    sums = jax.ops.segment_sum(node_feat, batch_vector, num_segments=num_graphs)
    counts = jax.ops.segment_sum(
        jnp.ones((node_feat.shape[0],), node_feat.dtype),
        batch_vector, num_segments=num_graphs)
    return sums / jnp.maximum(counts, 1.0)[:, None]


def deepstabp_forward(params, ogt, node_feat, batch_vector, num_graphs,
                      use_ogt=True):
    ogt = ogt[:, None].astype(jnp.float32)                   # (B, 1)
    node_feat = node_feat.astype(jnp.float32)                # (N_nodes, 1024)
    batch_vector = batch_vector.astype(jnp.int32)            # (N_nodes,)

    cell = jnp.zeros_like(ogt)
    lysate = jnp.ones_like(ogt)
    cell_emb = _embedding_block_jnp(params["cell"], cell)     # (B, 10)
    lysate_emb = _embedding_block_jnp(params["lysate"], lysate)
    feat_emb = _global_mean_pool(node_feat, batch_vector, num_graphs)  # (B, 1024)

    if use_ogt:
        ogt_emb = _embedding_block_jnp(params["ogt"], ogt)
        x = jnp.concatenate([cell_emb, lysate_emb, feat_emb, ogt_emb], axis=1)
    else:
        x = jnp.concatenate([cell_emb, lysate_emb, feat_emb], axis=1)

    # Linear -> SELU -> BatchNorm1d(eval) -> Dropout(identity), all fused per layer
    for layer in params["fc_hidden"]:
        x = fused_linear_selu_bn(x, layer)

    # Final Linear 128 -> 1 (no activation / BN)
    last = params["fc_last"]
    return x @ last["w"] + last["b"]                          # (B, 1)


# ---------------------------------------------------------------------------
if __name__ == "__main__":
    key = jax.random.PRNGKey(0)
    k_params, k_ogt, k_feat = jax.random.split(key, 3)

    B = 2                      # number of graphs in the batch
    N_NODES = 8                # total residues across the batch
    NODE_DIM = 1024            # fixed by the model

    params = init_deepstabp_params(k_params, use_ogt=True)

    ogt = jax.random.uniform(k_ogt, (B,), jnp.float32, 20.0, 40.0)
    node_feat = jax.random.normal(k_feat, (N_NODES, NODE_DIM), jnp.float32)
    batch_vector = jnp.array([0, 0, 0, 1, 1, 1, 1, 1], dtype=jnp.int32)

    out = deepstabp_forward(params, ogt, node_feat, batch_vector, B,
                            use_ogt=True)
    out = jax.block_until_ready(out)
    assert out.shape == (B, 1)
    print("KERNEL_OK")
</pallas_src>

<mosaic_0001>
module attributes {stable_mosaic.version = 11 : i64} {
  func.func @_fused_linear_selu_bn_kernel(%arg0: i32, %arg1: i32, %arg2: memref<16x1152xbf16, #tpu.memory_space<vmem>>, %arg3: memref<1152x512xbf16, #tpu.memory_space<vmem>>, %arg4: memref<1x512xf32, #tpu.memory_space<vmem>>, %arg5: memref<1x512xf32, #tpu.memory_space<vmem>>, %arg6: memref<1x512xf32, #tpu.memory_space<vmem>>, %arg7: memref<16x512xf32, #tpu.memory_space<vmem>>) attributes {dimension_semantics = [#tpu.dimension_semantics<parallel>, #tpu.dimension_semantics<parallel>], iteration_bounds = array<i64: 1, 9>, scalar_prefetch = 0 : i64, scratch_operands = 0 : i64, tpu.core_type = #tpu.core_type<tc>, window_params = [{transform_indices = @transform_0, window_bounds = array<i64: 16, 1152>}, {transform_indices = @transform_1, window_bounds = array<i64: 1152, 512>}, {transform_indices = @transform_2, window_bounds = array<i64: 1, 512>}, {transform_indices = @transform_3, window_bounds = array<i64: 1, 512>}, {transform_indices = @transform_4, window_bounds = array<i64: 1, 512>}, {transform_indices = @transform_5, window_bounds = array<i64: 16, 512>}]} {
    %c0 = arith.constant 0 : index
    %c0_0 = arith.constant 0 : index
    %0 = vector.load %arg2[%c0, %c0_0] : memref<16x1152xbf16, #tpu.memory_space<vmem>>, vector<16x1152xbf16>
    %c0_1 = arith.constant 0 : index
    %c0_2 = arith.constant 0 : index
    %1 = vector.load %arg3[%c0_1, %c0_2] : memref<1152x512xbf16, #tpu.memory_space<vmem>>, vector<1152x512xbf16>
    %cst = arith.constant dense<0.000000e+00> : vector<16x512xf32>
    %2 = tpu.matmul %0, %1, %cst {dimension_numbers = #tpu.dot_dimension_numbers<[1], [0], [0], [1], [0, 0, 1, 1], [], []>} : vector<16x1152xbf16>, vector<1152x512xbf16>, vector<16x512xf32> -> vector<16x512xf32>
    %c0_3 = arith.constant 0 : index
    %c0_4 = arith.constant 0 : index
    %3 = vector.load %arg4[%c0_3, %c0_4] : memref<1x512xf32, #tpu.memory_space<vmem>>, vector<1x512xf32>
    %4 = vector.broadcast %3 : vector<1x512xf32> to vector<16x512xf32>
    %5 = arith.addf %2, %4 : vector<16x512xf32>
    %cst_5 = arith.constant 0.000000e+00 : f32
    %6 = vector.broadcast %cst_5 : f32 to vector<16x512xf32>
    %7 = arith.cmpf ogt, %5, %6 : vector<16x512xf32>
    %8 = math.exp %5 : vector<16x512xf32>
    %cst_6 = arith.constant 1.000000e+00 : f32
    %9 = vector.broadcast %cst_6 : f32 to vector<16x512xf32>
    %10 = arith.subf %8, %9 : vector<16x512xf32>
    %cst_7 = arith.constant 1.67326319 : f32
    %11 = vector.broadcast %cst_7 : f32 to vector<16x512xf32>
    %12 = arith.mulf %11, %10 : vector<16x512xf32>
    %13 = arith.select %7, %5, %12 : vector<16x512xi1>, vector<16x512xf32>
    %c0_8 = arith.constant 0 : index
    %c0_9 = arith.constant 0 : index
    %14 = vector.load %arg5[%c0_8, %c0_9] : memref<1x512xf32, #tpu.memory_space<vmem>>, vector<1x512xf32>
    %15 = vector.broadcast %14 : vector<1x512xf32> to vector<16x512xf32>
    %16 = arith.mulf %13, %15 : vector<16x512xf32>
    %c0_10 = arith.constant 0 : index
    %c0_11 = arith.constant 0 : index
    %17 = vector.load %arg6[%c0_10, %c0_11] : memref<1x512xf32, #tpu.memory_space<vmem>>, vector<1x512xf32>
    %18 = vector.broadcast %17 : vector<1x512xf32> to vector<16x512xf32>
    %19 = arith.addf %16, %18 : vector<16x512xf32>
    %c0_12 = arith.constant 0 : index
    %c0_13 = arith.constant 0 : index
    %20 = vector.load %arg7[%c0_12, %c0_13] : memref<16x512xf32, #tpu.memory_space<vmem>>, vector<16x512xf32>
    tpu.vector_store %arg7[%c0_12, %c0_13], %19 {strides = array<i32>} : memref<16x512xf32, #tpu.memory_space<vmem>>, vector<16x512xf32>,
    return
  }
  func.func @transform_0(%arg0: i32, %arg1: i32) -> (i32, i32) {
    %c0_i32 = arith.constant 0 : i32
    %c0_i32_0 = arith.constant 0 : i32
    return %arg0, %c0_i32 : i32, i32
  }
  func.func @transform_1(%arg0: i32, %arg1: i32) -> (i32, i32) {
    %c0_i32 = arith.constant 0 : i32
    %c0_i32_0 = arith.constant 0 : i32
    return %c0_i32, %arg1 : i32, i32
  }
  func.func @transform_2(%arg0: i32, %arg1: i32) -> (i32, i32) {
    %c0_i32 = arith.constant 0 : i32
    %c0_i32_0 = arith.constant 0 : i32
    return %c0_i32, %arg1 : i32, i32
  }
  func.func @transform_3(%arg0: i32, %arg1: i32) -> (i32, i32) {
    %c0_i32 = arith.constant 0 : i32
    %c0_i32_0 = arith.constant 0 : i32
    return %c0_i32, %arg1 : i32, i32
  }
  func.func @transform_4(%arg0: i32, %arg1: i32) -> (i32, i32) {
    %c0_i32 = arith.constant 0 : i32
    %c0_i32_0 = arith.constant 0 : i32
    return %c0_i32, %arg1 : i32, i32
  }
  func.func @transform_5(%arg0: i32, %arg1: i32) -> (i32, i32) {
    %c0_i32 = arith.constant 0 : i32
    return %arg0, %arg1 : i32, i32
  }
}

</mosaic_0001>

<bundles_post_ra>
// kernel: tpu_custom_call.1
= control target key start
LH: loop header
LB: loop body
LE: loop exit
PB: predicated region body
PF: predicated region fallthrough
CT: control target
= control target key end

     0   :  { %s4823_s0 = inlined_call_operand.hbm [shape: bf16[16,1152], index: 0, kind: input, shape index: {}]   ;;  %s4824_s1 = inlined_call_operand.hbm [shape: bf16[1152,4608], index: 1, kind: input, shape index: {}]   ;;  %s4825_s2 = inlined_call_operand.hbm [shape: f32[1,4608], index: 2, kind: input, shape index: {}]   ;;  %s4826_s3 = inlined_call_operand.hbm [shape: f32[1,4608], index: 3, kind: input, shape index: {}]   ;;  %s4827_s4 = inlined_call_operand.hbm [shape: f32[1,4608], index: 4, kind: input, shape index: {}]   ;;  %s4828_s5 = inlined_call_operand.hbm [shape: f32[16,4608], index: 5, kind: output, shape index: {}]  }
   0x1   :  { %4843 = sst [smem:[#allocation22_spill]] %s4824_s1 }
   0x2   :  { %4844 = sst [smem:[#allocation23_spill]] %s4826_s3 }
   0x3   :  { %10 = vsyncpa [#allocation3], 0 }
   0x4   :  { %11 = vsyncpa [#allocation6], 0 }
   0x5   :  { %13 = vsyncpa [#allocation6 + $0x1], 0 }
   0x6   :  { %14 = vsyncpa [#allocation9], 0 }
   0x7   :  { %16 = vsyncpa [#allocation9 + $0x1], 0 }
   0x8   :  { %17 = vsyncpa [#allocation4], 0 }
   0x9   :  { %19 = vsyncpa [#allocation4 + $0x1], 0  ;;  %s4149_s18 = smov 0   ;;  %s4151_s19 = smov 0  }
   0xa   :  { %s4153_s20 = smov 0   ;;  %s4155_s21 = smov 0  }
   0xb   :  { %s4157_s22 = smov 0   ;;  %s4159_s23 = smov 0  }
   0xc LB: > { %4845 = sst [smem:[#allocation16_spill]] %s4082_s18  ;;  %s34_s24 = sadd.s32 1, %s4098_s22  ;;  %s4102_s23 = sphi %s4159_s23, %s25_s23   ;;  %s4098_s22 = sphi %s4157_s22, %s4876_s22   ;;  %s4094_s21 = sphi %s4155_s21, %s4875_s21   ;;  %s4090_s20 = sphi %s4153_s20, %s4874_s20   ;;  %s4086_s19 = sphi %s4151_s19, %s4878_s19   ;;  %s4082_s18 = sphi %s4149_s18, %s4877_s18  }
   0xd   : > { %4846 = sst [smem:[#allocation17_spill]] %s4090_s20  ;;  %s70_s25 = sadd.s32 1, %s4090_s20 }
   0xe   : > { %4847 = sst [smem:[#allocation18_spill]] %s4098_s22  ;;  %p35_p0 = scmp.ge.s32.totalorder %s34_s24, 9 }
   0xf   : > { %p4829_p1 = scmp.ne.s32.totalorder %s4090_s20, %s4086_s19  ;;  %p78_p2 = scmp.eq.s32.totalorder %s4102_s23, 0 }
  0x10   : > { %s4880_s24 = smov (%p35_p0, %s34_s24), 0  ;;  %p3342_p4 = scmp.lt.s32.totalorder %s4102_s23, 9 }
  0x11   : > { %4848 = sst [smem:[#allocation19_spill]] %s4880_s24  ;;  %p79_p3 = por %p78_p2, %p4829_p1 }
  0x12   : > { %s67_s26 = ssub.s32 %s4098_s22, %s4880_s24  ;;  %s230_s27 = sand.u32 1, %s4102_s23  }
  0x13   : > { %p68_p5 = scmp.eq.s32.totalorder %s67_s26, 0  ;;  %s232_s28 = sand.u32 1, %s4090_s20  }
  0x14   : > { %s3259_s29 = sshll.u32 %s4098_s22, 8  ;;  %s3304_s6 = smul.u32 2304, %s232_s28 }
  0x15   : > { %s4196_s30 = scalar_select %p68_p5, %s4090_s20, %s70_s25  }
  0x16   : > { %s4850_s1 = sld [smem:[#allocation22_spill]]  ;;  %p4205_p6 = pnand %p3342_p4, %p79_p3 }
  0x17   : > { %4849 = sst [smem:[#allocation20_spill]] %s4196_s30  ;;  %s234_s11 = scalar_lea.vmem [#allocation5], %s3304_s6 }
  0x18   : > { %s4851_s10 = scalar_select %p4205_p6, 1, 0 }
  0x19   : > { %s241_s12 = sshll.u32 %s234_s11, 4  ;;  %s4213_s13 = scalar_lea.sflag [#allocation6], %s230_s27  ;;  %s4209_s12 = int_to_ptr.vmem [resolvable:$true] %s241_s12 }
  0x1a   : > { %p4219_p8 = pneg %p4205_p6 }
  0x1c   : > { %s4203_s9 = scalar_lea.hbm %s4850_s1, %s3259_s29  ;;  %s3869_s25 = scalar_lea.hbm %s4850_s1, 331776 }
  0x1d   : > { %s3864_s14 = scalar_lea.hbm %s4203_s9, 36864  ;;  %p3870_p11 = scmp.lt.u32.totalorder %s4203_s9, %s4850_s1 }
  0x1e   : > { %p3865_p7 = scmp.ne.s32.totalorder %s4203_s9, %s3864_s14  ;;  %p3871_p12 = scmp.lt.u32.totalorder %s3869_s25, %s3864_s14 }
  0x1f   : > { %s4852_s15 = scalar_select %p4219_p8, 1, 0 }
  0x20   : > { %p3867_p9 = pnand %p4219_p8, %p3865_p7  ;;  %p3872_p13 = por %p3871_p12, %p3870_p11 }
  0x21   : > { %p3873_p0 = scmp.lt.u32.totalorder %s3864_s14, %s4203_s9 }
  0x22   : > { %p3868_p10 = pneg %p3867_p9 }
  0x23   : > { %p3874_p2 = por %p3873_p0, %p3872_p13 }
  0x25   : > { %p3875_p3 = pnand %p3874_p2, %p3868_p10 }
  0x27   : > { %3878 = shalt.err (!%p3875_p3)
}
  0x28   : > { %s3879_s6 = scalar_lea.vmem %s4209_s12, 36864  ;;  %s4104_s7 = smov [#allocation5]  }
  0x29   : > { %p3880_p4 = scmp.ne.s32.totalorder %s4209_s12, %s3879_s6  ;;  %s3884_s8 = sshll.u32 %s4104_s7, 4  ;;  %s3885_s8 = int_to_ptr.vmem [resolvable:$false] %s3884_s8 }
  0x2a   : > { %s3886_s11 = scalar_lea.vmem %s3885_s8, 73728  ;;  %p3887_p9 = scmp.lt.s32.totalorder %s4209_s12, %s3885_s8 }
  0x2b   : > { %p3882_p5 = pnand %p3880_p4, %p4219_p8  ;;  %p3888_p1 = scmp.lt.s32.totalorder %s3886_s11, %s3879_s6 }
  0x2d   : > { %p3883_p7 = pneg %p3882_p5  ;;  %p3889_p11 = por %p3888_p1, %p3887_p9 }
  0x2f   : > { %p3890_p12 = pnand %p3889_p11, %p3883_p7 }
  0x31   : > { %3893 = shalt.err (!%p3890_p12)
}
  0x32   : > { %s4105_s14 = smov 2304   ;;  %s4106_s16 = smov 256  }
  0x33   : > { %s4107_s17 = smov 16   ;;  %s4245_s25 = sshll.u32 %s232_s28, 2 }
  0x34   : > { %3327 = dma.hbm_to_vmem [thread:$0]  (!%p4205_p6), %s4203_s9, 36864, %s4209_s12, %s4213_s13, %s4105_s14, %s4106_s16, %s4107_s17  }
  0x35   : > { %s4248_s26 = sshll.u32 %s4098_s22, 6  ;;  %s4853_s3 = sld [smem:[#allocation23_spill]] }
  0x36   : > { %s274_s8 = scalar_lea.vmem [#allocation8], %s4245_s25  ;;  %s4259_s9 = scalar_lea.sflag [#allocation9], %s230_s27 }
  0x37   : > { %s282_s11 = sshll.u32 %s274_s8, 4  ;;  %s283_s11 = int_to_ptr.vmem [resolvable:$true] %s282_s11 }
  0x3b   : > { %s4254_s7 = scalar_lea.hbm %s4853_s3, %s4248_s26  ;;  %s3899_s16 = scalar_lea.hbm %s4853_s3, 576 }
  0x3c   : > { %s3894_s28 = scalar_lea.hbm %s4254_s7, 64  ;;  %p3900_p0 = scmp.lt.u32.totalorder %s4254_s7, %s4853_s3 }
  0x3d   : > { %p3895_p1 = scmp.ne.s32.totalorder %s4254_s7, %s3894_s28  ;;  %p3901_p2 = scmp.lt.u32.totalorder %s3899_s16, %s3894_s28 }
  0x3e   : > { %p3903_p4 = scmp.lt.u32.totalorder %s3894_s28, %s4254_s7 }
  0x3f   : > { %p3897_p10 = pnand %p3895_p1, %p4219_p8  ;;  %p3902_p3 = por %p3901_p2, %p3900_p0 }
  0x41   : > { %p3898_p13 = pneg %p3897_p10  ;;  %p3904_p5 = por %p3903_p4, %p3902_p3 }
  0x43   : > { %p3905_p7 = pnand %p3904_p5, %p3898_p13 }
  0x45   : > { %3908 = shalt.err (!%p3905_p7)
}
  0x46   : > { %s3909_s27 = scalar_lea.vmem %s283_s11, 64  ;;  %s4108_s6 = smov [#allocation8]  }
  0x47   : > { %p3910_p9 = scmp.ne.s32.totalorder %s283_s11, %s3909_s27  ;;  %s3914_s8 = sshll.u32 %s4108_s6, 4  ;;  %s3915_s8 = int_to_ptr.vmem [resolvable:$false] %s3914_s8 }
  0x48   : > { %s3916_s12 = scalar_lea.vmem %s3915_s8, 128  ;;  %p3917_p1 = scmp.lt.s32.totalorder %s283_s11, %s3915_s8 }
  0x49   : > { %p3912_p11 = pnand %p3910_p9, %p4219_p8  ;;  %p3918_p10 = scmp.lt.s32.totalorder %s3916_s12, %s3909_s27 }
  0x4b   : > { %p3913_p12 = pneg %p3912_p11  ;;  %p3919_p6 = por %p3918_p10, %p3917_p1 }
  0x4d   : > { %p3920_p0 = pnand %p3919_p6, %p3913_p12 }
  0x4f   : > { %3923 = shalt.err (!%p3920_p0)
}
  0x50   : > { %p4854_p2 = scmp.ne.s32.totalorder %s4851_s10, 0  ;;  %s4280_s28 = sadd.s32 4294967295, %s4102_s23  }
  0x51   : > { %s2928_s14 = sadd.s32 4294967294, %s4102_s23   ;;  %p83_p6 = scmp.ne.s32.totalorder %s4086_s19, %s4082_s18 }
  0x52   : > { %3333 = dma.hbm_to_vmem [thread:$0]  (!%p4854_p2), %s4254_s7, 64, %s283_s11, %s4259_s9  }
  0x53   : > { %p4837_p13 = scmp.eq.s32.totalorder %s4280_s28, 0  ;;  %p187_p3 = scmp.eq.s32.totalorder %s4280_s28, 8 }
  0x54   : > { %p193_p4 = scmp.eq.s32.totalorder %s2928_s14, 8  ;;  %p2929_p5 = scmp.ge.s32.totalorder %s4102_s23, 1 }
  0x55   : > { %p4290_p7 = por %p4837_p13, %p83_p6  ;;  %p4856_p9 = scmp.ne.s32.totalorder %s4090_s20, %s4086_s19 }
  0x56   : > { %p4301_p12 = por %p193_p4, %p83_p6  ;;  %p200_p1 = scmp.lt.s32.totalorder %s4102_s23, 10 }
  0x57   : > { %s4855_s16 = scalar_select %p4290_p7, 1, 0 }
  0x58   : > { %p4297_p11 = por %p187_p3, %p4856_p9  ;;  %p4306_p10 = pnand %p2929_p5, %p200_p1 }
  0x59   : > { %s4858_s11 = scalar_select %p4301_p12, 1, 0 }
  0x5a   : > { %s4857_s7 = scalar_select %p4297_p11, 1, 0 }
  0x5b   : > { %4859 = sst [smem:[#allocation21_spill]] %s4858_s11  ;;  %s4109_s29 = smov [#allocation2]  }
  0x5c   : > { %s4860_s17 = scalar_select %p4306_p10, 1, 0 }
  0x5d   : > { %s216_s27 = sshll.u32 %s4109_s29, 4  ;;  %p3320_p0 = pneg %p4306_p10  ;;  %s4310_s27 = int_to_ptr.vmem [resolvable:$true] %s216_s27 }
  0x5e   : > { %s4318_s12 = scalar_lea.hbm %s4825_s2, %s4248_s26  ;;  %s255_s1 = scalar_lea.vmem [#allocation7], %s4245_s25 }
  0x5f   : > { %p4322_p6 = pnand %p3320_p0, %p4837_p13  ;;  %s263_s3 = sshll.u32 %s255_s1, 4  ;;  %s4327_s3 = int_to_ptr.vmem [resolvable:$true] %s263_s3 }
  0x60   : > { %s4333_s22 = scalar_lea.hbm %s4827_s4, %s4248_s26  ;;  %s3924_s6 = scalar_lea.hbm %s4823_s0, 1152 }
  0x61   : > { %p3925_p3 = scmp.ne.s32.totalorder %s4823_s0, %s3924_s6  ;;  %p3926_p4 = pneg %p4322_p6 }
  0x62   : > { %p3931_p1 = scmp.lt.u32.totalorder %s3924_s6, %s4823_s0 }
  0x63   : > { %p3927_p5 = pnand %p3926_p4, %p3925_p3 }
  0x65   : > { %p3928_p9 = pneg %p3927_p5 }
  0x67   : > { %p3933_p0 = pnand %p3931_p1, %p3928_p9 }
  0x69   : > { %3936 = shalt.err (!%p3933_p0)
}
  0x6a   : > { %s3937_s24 = scalar_lea.vmem %s4310_s27, 1152  ;;  %p3945_p7 = scmp.lt.s32.totalorder %s4310_s27, %s4310_s27 }
  0x6b   : > { %p3938_p13 = scmp.ne.s32.totalorder %s4310_s27, %s3937_s24  ;;  %p3946_p10 = scmp.lt.s32.totalorder %s3937_s24, %s3937_s24 }
  0x6d   : > { %p3940_p12 = pnand %p3938_p13, %p3926_p4  ;;  %p3947_p2 = por %p3946_p10, %p3945_p7 }
  0x6f   : > { %p3941_p11 = pneg %p3940_p12 }
  0x71   : > { %p3948_p8 = pnand %p3947_p2, %p3941_p11 }
  0x73   : > { %3951 = shalt.err (!%p3948_p8)
}
  0x74   : > { %s4110_s20 = smov 576   ;;  %s4111_s18 = smov 36  }
  0x75   : > { %3323 = dma.hbm_to_vmem [thread:$0]  (!%p4322_p6), %s4823_s0, 1152, %s4310_s27, [#allocation3], %s4110_s20, %s4110_s20, %s4111_s18  }
  0x76   : > { %s3952_s11 = scalar_lea.hbm %s4318_s12, 64  ;;  %p4862_p12 = scmp.ne.s32.totalorder %s4852_s15, 0 }
  0x77   : > { %p3953_p13 = scmp.ne.s32.totalorder %s4318_s12, %s3952_s11  ;;  %s3957_s8 = scalar_lea.hbm %s4825_s2, 576 }
  0x78   : > { %p3958_p8 = scmp.lt.u32.totalorder %s4318_s12, %s4825_s2  ;;  %p3959_p11 = scmp.lt.u32.totalorder %s3957_s8, %s3952_s11 }
  0x79   : > { %p3955_p7 = pnand %p3953_p13, %p4862_p12  ;;  %p3961_p3 = scmp.lt.u32.totalorder %s3952_s11, %s4318_s12 }
  0x7a   : > { %p3960_p10 = por %p3959_p11, %p3958_p8 }
  0x7b   : > { %p3956_p2 = pneg %p3955_p7 }
  0x7c   : > { %p3962_p4 = por %p3961_p3, %p3960_p10 }
  0x7e   : > { %p3963_p5 = pnand %p3962_p4, %p3956_p2 }
  0x80   : > { %3966 = shalt.err (!%p3963_p5)
}
  0x81   : > { %s3967_s27 = scalar_lea.vmem %s4327_s3, 64  ;;  %s4112_s14 = smov [#allocation7]  }
  0x82   : > { %p3968_p6 = scmp.ne.s32.totalorder %s4327_s3, %s3967_s27  ;;  %s3972_s20 = sshll.u32 %s4112_s14, 4  ;;  %s3973_s20 = int_to_ptr.vmem [resolvable:$false] %s3972_s20 }
  0x83   : > { %s3974_s18 = scalar_lea.vmem %s3973_s20, 128  ;;  %p3975_p0 = scmp.lt.s32.totalorder %s4327_s3, %s3973_s20 }
  0x84   : > { %p3970_p9 = pnand %p3968_p6, %p4862_p12  ;;  %p3976_p13 = scmp.lt.s32.totalorder %s3974_s18, %s3967_s27 }
  0x86   : > { %p3971_p1 = pneg %p3970_p9  ;;  %p3977_p7 = por %p3976_p13, %p3975_p0 }
  0x88   : > { %p3978_p8 = pnand %p3977_p7, %p3971_p1 }
  0x8a   : > { %3981 = shalt.err (!%p3978_p8)
}
  0x8b   : > { %p4863_p2 = scmp.ne.s32.totalorder %s4851_s10, 0  ;;  %s293_s30 = scalar_lea.vmem [#allocation10], %s4245_s25 }
  0x8c   : > { %s301_s26 = sshll.u32 %s293_s30, 4  ;;  %s3982_s11 = scalar_lea.hbm %s4333_s22, 64  ;;  %s302_s26 = int_to_ptr.vmem [resolvable:$true] %s301_s26 }
  0x8d   : > { %3330 = dma.hbm_to_vmem [thread:$0]  (!%p4863_p2), %s4318_s12, 64, %s4327_s3, %s4213_s13  }
  0x8e   : > { %p3983_p11 = scmp.ne.s32.totalorder %s4333_s22, %s3982_s11  ;;  %s3987_s8 = scalar_lea.hbm %s4827_s4, 576 }
  0x8f   : > { %p3988_p4 = scmp.lt.u32.totalorder %s4333_s22, %s4827_s4  ;;  %p3989_p5 = scmp.lt.u32.totalorder %s3987_s8, %s3982_s11 }
  0x90   : > { %p3985_p10 = pnand %p3983_p11, %p4862_p12  ;;  %p3991_p9 = scmp.lt.u32.totalorder %s3982_s11, %s4333_s22 }
  0x91   : > { %p3990_p6 = por %p3989_p5, %p3988_p4 }
  0x92   : > { %p3986_p3 = pneg %p3985_p10 }
  0x93   : > { %p3992_p1 = por %p3991_p9, %p3990_p6 }
  0x95   : > { %p3993_p0 = pnand %p3992_p1, %p3986_p3 }
  0x97   : > { %3996 = shalt.err (!%p3993_p0)
}
  0x98   : > { %s3997_s3 = scalar_lea.vmem %s302_s26, 64  ;;  %s4113_s13 = smov [#allocation10]  }
  0x99   : > { %p3998_p13 = scmp.ne.s32.totalorder %s302_s26, %s3997_s3  ;;  %s4002_s25 = sshll.u32 %s4113_s13, 4  ;;  %s4003_s25 = int_to_ptr.vmem [resolvable:$false] %s4002_s25 }
  0x9a   : > { %s4004_s12 = scalar_lea.vmem %s4003_s25, 128  ;;  %p4005_p11 = scmp.lt.s32.totalorder %s302_s26, %s4003_s25 }
  0x9b   : > { %p4000_p7 = pnand %p3998_p13, %p4862_p12  ;;  %p4006_p10 = scmp.lt.s32.totalorder %s4004_s12, %s3997_s3 }
  0x9d   : > { %p4001_p8 = pneg %p4000_p7  ;;  %p4007_p2 = por %p4006_p10, %p4005_p11 }
  0x9f   : > { %p4008_p4 = pnand %p4007_p2, %p4001_p8 }
  0xa1   : > { %4011 = shalt.err (!%p4008_p4)
}
  0xa2   : > { %p4864_p5 = scmp.ne.s32.totalorder %s4851_s10, 0  ;;  %p4865_p3 = scmp.ne.s32.totalorder %s4860_s17, 0 }
  0xa3   : > { %p4866_p12 = scmp.eq.s32.totalorder (!%p4865_p3), %s4280_s28, 0 }
  0xa4   : > { %3336 = dma.hbm_to_vmem [thread:$0]  (!%p4864_p5), %s4333_s22, 64, %s302_s26, %s4259_s9  }
  0xa5   : > { %310 = sbr.rel (%p4865_p3) target bundleno = 731 (0x2db), region = 40 }
  0xac   : > { %4065 = dma.done.wait (%p4866_p12), [#allocation3], 1152   ;;  %p4867_p6 = pmov %p4866_p12 }
  0xad   : > { %s316_s15 = sand.u32 1, %s4280_s28   ;;  %s4405_s27 = sand.u32 1, %s4086_s19  }
  0xae   : > { %4067 = vsyncadd (%p4867_p6), [#allocation3], 4294966144  ;;  %s3305_s10 = smul.u32 2304, %s4405_s27  ;;  %s317_s14 = scalar_lea.sflag [#allocation6], %s316_s15 }
  0xaf   : > { %p4868_p2 = scmp.ne.s32.totalorder %s4855_s16, 0 }
  0xb0   : > { %s4408_s20 = scalar_lea.vmem [#allocation5], %s3305_s10 }
  0xb1   : > { %4069 = dma.done.wait (%p4868_p2), %s317_s14, 36928  }
  0xb2   : > { %4071 = vsyncadd (%p4868_p2), %s317_s14, 4294930368  ;;  %s4415_s22 = sshll.u32 %s4405_s27, 2  ;;  %s335_s28 = scalar_lea.sflag [#allocation9], %s316_s15 }
  0xb3   : > { %s329_s9 = scalar_lea.vmem [#allocation7], %s4415_s22  ;;  %s338_s17 = scalar_lea.vmem [#allocation8], %s4415_s22 }
  0xb4   : > { %4073 = dma.done.wait (%p4868_p2), %s335_s28, 128  }
  0xb5   : > { %4075 = vsyncadd (%p4868_p2), %s335_s28, 4294967168  ;;  %v3403_v0 = vld [vmem:[%s4408_s20 + $0x4] ss:$16 sps:$4 sm:$0xff]   ;;  %v3405_v1 = vld [vmem:[%s4408_s20 + $0xc] ss:$16 sps:$4 sm:$0xff]   ;;  %s347_s16 = scalar_lea.vmem [#allocation10], %s4415_s22 }
  0xb6   : > { %2203 = vmatprep.subr.bf16.mxu0 %v3403_v0  ;;  %v3407_v2 = vld [vmem:[%s4408_s20] ss:$16 sps:$4 sm:$0xff]   ;;  %v3408_v3 = vld [vmem:[%s4408_s20 + $0x8] ss:$16 sps:$4 sm:$0xff]   ;;  %2418 = vmatprep.subr.bf16.mxu1 %v3405_v1  ;;  %v3409_v4 = vld [vmem:[%s4408_s20 + $0x24] ss:$16 sps:$4 sm:$0xff]  }
  0xb7   : > { %2204 = vmatpush1.bf16.msra.mxu0 %v3407_v2  ;;  %2419 = vmatpush1.bf16.msra.mxu1 %v3408_v3  ;;  %v3411_v5 = vld [vmem:[%s4408_s20 + $0x2c] ss:$16 sps:$4 sm:$0xff]   ;;  %v3413_v6 = vld [vmem:[%s4408_s20 + $0x20] ss:$16 sps:$4 sm:$0xff]   ;;  %v3414_v7 = vld [vmem:[%s4408_s20 + $0x28] ss:$16 sps:$4 sm:$0xff]  }
  0xb8   : > { %2205 = vmatprep.subr.bf16.mxu0 %v3409_v4  ;;  %2420 = vmatprep.subr.bf16.mxu1 %v3411_v5  ;;  %v3415_v8 = vld [vmem:[%s4408_s20 + $0x44] ss:$16 sps:$4 sm:$0xff]   ;;  %v3417_v9 = vld [vmem:[%s4408_s20 + $0x4c] ss:$16 sps:$4 sm:$0xff]   ;;  %v3419_v10 = vld [vmem:[%s4408_s20 + $0x40] ss:$16 sps:$4 sm:$0xff]  }
  0xb9   : > { %v3420_v11 = vld [vmem:[%s4408_s20 + $0x48] ss:$16 sps:$4 sm:$0xff]   ;;  %v3421_v12 = vld [vmem:[%s4408_s20 + $0x64] ss:$16 sps:$4 sm:$0xff]   ;;  %v3423_v13 = vld [vmem:[%s4408_s20 + $0x6c] ss:$16 sps:$4 sm:$0xff]  }
  0xba   : > { %v3425_v14 = vld [vmem:[%s4408_s20 + $0x60] ss:$16 sps:$4 sm:$0xff]   ;;  %v3426_v15 = vld [vmem:[%s4408_s20 + $0x68] ss:$16 sps:$4 sm:$0xff]   ;;  %v3427_v16 = vld [vmem:[%s4408_s20 + $0x84] ss:$16 sps:$4 sm:$0xff]  }
  0xbb   : > { %2206 = vmatpush1.bf16.msra.mxu0 %v3413_v6  ;;  %2421 = vmatpush1.bf16.msra.mxu1 %v3414_v7  ;;  %v3429_v17 = vld [vmem:[%s4408_s20 + $0x8c] ss:$16 sps:$4 sm:$0xff]   ;;  %v3431_v18 = vld [vmem:[%s4408_s20 + $0x80] ss:$16 sps:$4 sm:$0xff]   ;;  %v3432_v19 = vld [vmem:[%s4408_s20 + $0x88] ss:$16 sps:$4 sm:$0xff]  }
  0xbc   : > { %2207 = vmatprep.subr.bf16.mxu0 %v3415_v8  ;;  %2422 = vmatprep.subr.bf16.mxu1 %v3417_v9  ;;  %v3433_v20 = vld [vmem:[%s4408_s20 + $0xa4] ss:$16 sps:$4 sm:$0xff]   ;;  %v3435_v21 = vld [vmem:[%s4408_s20 + $0xac] ss:$16 sps:$4 sm:$0xff]   ;;  %v3437_v22 = vld [vmem:[%s4408_s20 + $0xa0] ss:$16 sps:$4 sm:$0xff]  }
  0xbd   : > { %v3438_v23 = vld [vmem:[%s4408_s20 + $0xa8] ss:$16 sps:$4 sm:$0xff]   ;;  %v3439_v24 = vld [vmem:[%s4408_s20 + $0xc4] ss:$16 sps:$4 sm:$0xff]   ;;  %v3441_v25 = vld [vmem:[%s4408_s20 + $0xcc] ss:$16 sps:$4 sm:$0xff]  }
  0xbe   : > { %v3443_v26 = vld [vmem:[%s4408_s20 + $0xc0] ss:$16 sps:$4 sm:$0xff]   ;;  %v3444_v27 = vld [vmem:[%s4408_s20 + $0xc8] ss:$16 sps:$4 sm:$0xff]   ;;  %v3445_v28 = vld [vmem:[%s4408_s20 + $0xe4] ss:$16 sps:$4 sm:$0xff]  }
  0xbf   : > { %2208 = vmatpush1.bf16.msra.mxu0 %v3419_v10  ;;  %2423 = vmatpush1.bf16.msra.mxu1 %v3420_v11  ;;  %v3447_v29 = vld [vmem:[%s4408_s20 + $0xec] ss:$16 sps:$4 sm:$0xff]   ;;  %v3449_v30 = vld [vmem:[%s4408_s20 + $0xe0] ss:$16 sps:$4 sm:$0xff]   ;;  %v3450_v31 = vld [vmem:[%s4408_s20 + $0xe8] ss:$16 sps:$4 sm:$0xff]  }
  0xc0   : > { %2209 = vmatprep.subr.bf16.mxu0 %v3421_v12  ;;  %2424 = vmatprep.subr.bf16.mxu1 %v3423_v13  ;;  %v3451_v32 = vld [vmem:[%s4408_s20 + $0x104] ss:$16 sps:$4 sm:$0xff]   ;;  %v3453_v33 = vld [vmem:[%s4408_s20 + $0x10c] ss:$16 sps:$4 sm:$0xff]   ;;  %v3455_v34 = vld [vmem:[%s4408_s20 + $0x100] ss:$16 sps:$4 sm:$0xff]  }
  0xc1   : > { %v3456_v35 = vld [vmem:[%s4408_s20 + $0x108] ss:$16 sps:$4 sm:$0xff]   ;;  %v3457_v36 = vld [vmem:[%s4408_s20 + $0x124] ss:$16 sps:$4 sm:$0xff]   ;;  %v3459_v37 = vld [vmem:[%s4408_s20 + $0x12c] ss:$16 sps:$4 sm:$0xff]  }
  0xc2   : > { %v3461_v38 = vld [vmem:[%s4408_s20 + $0x120] ss:$16 sps:$4 sm:$0xff]   ;;  %v3462_v39 = vld [vmem:[%s4408_s20 + $0x128] ss:$16 sps:$4 sm:$0xff]   ;;  %v3463_v40 = vld [vmem:[%s4408_s20 + $0x144] ss:$16 sps:$4 sm:$0xff]  }
  0xc3   : > { %2210 = vmatpush1.bf16.msra.mxu0 %v3425_v14  ;;  %2425 = vmatpush1.bf16.msra.mxu1 %v3426_v15  ;;  %v3465_v41 = vld [vmem:[%s4408_s20 + $0x14c] ss:$16 sps:$4 sm:$0xff]   ;;  %v3467_v42 = vld [vmem:[%s4408_s20 + $0x140] ss:$16 sps:$4 sm:$0xff]   ;;  %v3468_v43 = vld [vmem:[%s4408_s20 + $0x148] ss:$16 sps:$4 sm:$0xff]  }
  0xc4   : > { %2211 = vmatprep.subr.bf16.mxu0 %v3427_v16  ;;  %2426 = vmatprep.subr.bf16.mxu1 %v3429_v17  ;;  %v3469_v44 = vld [vmem:[%s4408_s20 + $0x164] ss:$16 sps:$4 sm:$0xff]   ;;  %v3471_v45 = vld [vmem:[%s4408_s20 + $0x16c] ss:$16 sps:$4 sm:$0xff]   ;;  %v3473_v46 = vld [vmem:[%s4408_s20 + $0x160] ss:$16 sps:$4 sm:$0xff]  }
  0xc5   : > { %v3474_v47 = vld [vmem:[%s4408_s20 + $0x168] ss:$16 sps:$4 sm:$0xff]   ;;  %v3501_v48 = vld [vmem:[#allocation2 + $0x4] ss:$36 sps:$4 sm:$0xff]   ;;  %v3475_v49 = vld [vmem:[%s4408_s20 + $0x184] ss:$16 sps:$4 sm:$0xff]  }
  0xc6   : > { %v3477_v50 = vld [vmem:[%s4408_s20 + $0x18c] ss:$16 sps:$4 sm:$0xff]   ;;  %2235 = vmatprep.mubr.bf16.mxu0 %v3501_v48  ;;  %2450 = vmatprep.mubr.bf16.mxu1 %v3501_v48  ;;  %v3479_v51 = vld [vmem:[%s4408_s20 + $0x180] ss:$16 sps:$4 sm:$0xff]   ;;  %v3480_v52 = vld [vmem:[%s4408_s20 + $0x188] ss:$16 sps:$4 sm:$0xff]  }
  0xc7   : > { %2212 = vmatpush1.bf16.msra.mxu0 %v3431_v18  ;;  %2427 = vmatpush1.bf16.msra.mxu1 %v3432_v19  ;;  %v3481_v53 = vld [vmem:[%s4408_s20 + $0x1a4] ss:$16 sps:$4 sm:$0xff]   ;;  %v3483_v54 = vld [vmem:[%s4408_s20 + $0x1ac] ss:$16 sps:$4 sm:$0xff]   ;;  %v3485_v55 = vld [vmem:[%s4408_s20 + $0x1a0] ss:$16 sps:$4 sm:$0xff]  }
  0xc8   : > { %2213 = vmatprep.subr.bf16.mxu0 %v3433_v20  ;;  %2428 = vmatprep.subr.bf16.mxu1 %v3435_v21  ;;  %v3486_v56 = vld [vmem:[%s4408_s20 + $0x1a8] ss:$16 sps:$4 sm:$0xff]   ;;  %v3487_v57 = vld [vmem:[%s4408_s20 + $0x1c4] ss:$16 sps:$4 sm:$0xff]   ;;  %v3489_v58 = vld [vmem:[%s4408_s20 + $0x1cc] ss:$16 sps:$4 sm:$0xff]  }
  0xc9   : > { %v3491_v59 = vld [vmem:[%s4408_s20 + $0x1c0] ss:$16 sps:$4 sm:$0xff]   ;;  %v3492_v60 = vld [vmem:[%s4408_s20 + $0x1c8] ss:$16 sps:$4 sm:$0xff]   ;;  %v3493_v61 = vld [vmem:[%s4408_s20 + $0x1e4] ss:$16 sps:$4 sm:$0xff]  }
  0xca   : > { %v3495_v62 = vld [vmem:[%s4408_s20 + $0x1ec] ss:$16 sps:$4 sm:$0xff]   ;;  %v3497_v63 = vld [vmem:[%s4408_s20 + $0x1e0] ss:$16 sps:$4 sm:$0xff]   ;;  %v3498_v0 = vld [vmem:[%s4408_s20 + $0x1e8] ss:$16 sps:$4 sm:$0xff]  }
  0xcb   : > { %2214 = vmatpush1.bf16.msra.mxu0 %v3437_v22  ;;  %2429 = vmatpush1.bf16.msra.mxu1 %v3438_v23  ;;  %v3504_v1 = vld [vmem:[%s4408_s20 + $0x204] ss:$16 sps:$4 sm:$0xff]   ;;  %v3507_v2 = vld [vmem:[%s4408_s20 + $0x20c] ss:$16 sps:$4 sm:$0xff]   ;;  %v3502_v4 = vld [vmem:[%s4408_s20 + $0x200] ss:$16 sps:$4 sm:$0xff]  }
  0xcc   : > { %2215 = vmatprep.subr.bf16.mxu0 %v3439_v24  ;;  %2430 = vmatprep.subr.bf16.mxu1 %v3441_v25  ;;  %v3499_v3 = vld [vmem:[#allocation2] ss:$36 sps:$4 sm:$0xff]   ;;  %v3510_v6 = vld [vmem:[%s4408_s20 + $0x224] ss:$16 sps:$4 sm:$0xff]   ;;  %v3508_v8 = vld [vmem:[%s4408_s20 + $0x220] ss:$16 sps:$4 sm:$0xff]  }
  0xcd   : > { %v3505_v5 = vld [vmem:[%s4408_s20 + $0x208] ss:$16 sps:$4 sm:$0xff]   ;;  %v3513_v7 = vld [vmem:[%s4408_s20 + $0x22c] ss:$16 sps:$4 sm:$0xff]   ;;  %v3516_v10 = vld [vmem:[%s4408_s20 + $0x244] ss:$16 sps:$4 sm:$0xff]  }
  0xce   : > { %v3511_v9 = vld [vmem:[%s4408_s20 + $0x228] ss:$16 sps:$4 sm:$0xff]   ;;  %v3519_v11 = vld [vmem:[%s4408_s20 + $0x24c] ss:$16 sps:$4 sm:$0xff]   ;;  %v3514_v12 = vld [vmem:[%s4408_s20 + $0x240] ss:$16 sps:$4 sm:$0xff]  }
  0xcf   : > { %2216 = vmatpush1.bf16.msra.mxu0 %v3443_v26  ;;  %2431 = vmatpush1.bf16.msra.mxu1 %v3444_v27  ;;  %v3517_v13 = vld [vmem:[%s4408_s20 + $0x248] ss:$16 sps:$4 sm:$0xff]   ;;  %v3522_v14 = vld [vmem:[%s4408_s20 + $0x264] ss:$16 sps:$4 sm:$0xff]   ;;  %v3525_v15 = vld [vmem:[%s4408_s20 + $0x26c] ss:$16 sps:$4 sm:$0xff]  }
  0xd0   : > { %2217 = vmatprep.subr.bf16.mxu0 %v3445_v28  ;;  %2432 = vmatprep.subr.bf16.mxu1 %v3447_v29  ;;  %v3520_v16 = vld [vmem:[%s4408_s20 + $0x260] ss:$16 sps:$4 sm:$0xff]   ;;  %v3523_v17 = vld [vmem:[%s4408_s20 + $0x268] ss:$16 sps:$4 sm:$0xff]   ;;  %v3528_v18 = vld [vmem:[%s4408_s20 + $0x284] ss:$16 sps:$4 sm:$0xff]  }
  0xd1   : > { %v3531_v19 = vld [vmem:[%s4408_s20 + $0x28c] ss:$16 sps:$4 sm:$0xff]   ;;  %v3526_v20 = vld [vmem:[%s4408_s20 + $0x280] ss:$16 sps:$4 sm:$0xff]   ;;  %v3529_v21 = vld [vmem:[%s4408_s20 + $0x288] ss:$16 sps:$4 sm:$0xff]  }
  0xd2   : > { %v3534_v22 = vld [vmem:[%s4408_s20 + $0x2a4] ss:$16 sps:$4 sm:$0xff]   ;;  %v3537_v23 = vld [vmem:[%s4408_s20 + $0x2ac] ss:$16 sps:$4 sm:$0xff]   ;;  %v3532_v24 = vld [vmem:[%s4408_s20 + $0x2a0] ss:$16 sps:$4 sm:$0xff]  }
  0xd3   : > { %2218 = vmatpush1.bf16.msra.mxu0 %v3449_v30  ;;  %2433 = vmatpush1.bf16.msra.mxu1 %v3450_v31  ;;  %v3535_v25 = vld [vmem:[%s4408_s20 + $0x2a8] ss:$16 sps:$4 sm:$0xff]   ;;  %v3540_v26 = vld [vmem:[%s4408_s20 + $0x2c4] ss:$16 sps:$4 sm:$0xff]   ;;  %v3543_v27 = vld [vmem:[%s4408_s20 + $0x2cc] ss:$16 sps:$4 sm:$0xff]  }
  0xd4   : > { %2219 = vmatprep.subr.bf16.mxu0 %v3451_v32  ;;  %2434 = vmatprep.subr.bf16.mxu1 %v3453_v33  ;;  %v3538_v28 = vld [vmem:[%s4408_s20 + $0x2c0] ss:$16 sps:$4 sm:$0xff]   ;;  %v3541_v29 = vld [vmem:[%s4408_s20 + $0x2c8] ss:$16 sps:$4 sm:$0xff]   ;;  %v3546_v31 = vld [vmem:[%s4408_s20 + $0x2e4] ss:$16 sps:$4 sm:$0xff]  }
  0xd5   : > { %v3600_v30 = vld [vmem:[#allocation2 + $0xc] ss:$36 sps:$4 sm:$0xff]   ;;  %v3549_v32 = vld [vmem:[%s4408_s20 + $0x2ec] ss:$16 sps:$4 sm:$0xff]   ;;  %v3544_v33 = vld [vmem:[%s4408_s20 + $0x2e0] ss:$16 sps:$4 sm:$0xff]  }
  0xd6   : > { %v3573_v48 = vld [vmem:[%s4408_s20 + $0x36c] ss:$16 sps:$4 sm:$0xff]   ;;  %s2948_s18 = sshll.u32 %s4405_s27, 6  ;;  %s3263_s11 = sshll.u32 %s4094_s21, 9 }
  0xd7   : > { %2220 = vmatpush1.bf16.msra.mxu0 %v3455_v34  ;;  %2435 = vmatpush1.bf16.msra.mxu1 %v3456_v35  ;;  %v3547_v34 = vld [vmem:[%s4408_s20 + $0x2e8] ss:$16 sps:$4 sm:$0xff]   ;;  %v3552_v35 = vld [vmem:[%s4408_s20 + $0x304] ss:$16 sps:$4 sm:$0xff]   ;;  %s388_s30 = scalar_lea.vmem [#allocation11], %s2948_s18  ;;  %s4775_s8 = scalar_lea.hbm %s4828_s5, %s3263_s11 }
  0xd8   : > { %2221 = vmatprep.subr.bf16.mxu0 %v3457_v36  ;;  %2436 = vmatprep.subr.bf16.mxu1 %v3459_v37  ;;  %v3555_v36 = vld [vmem:[%s4408_s20 + $0x30c] ss:$16 sps:$4 sm:$0xff]   ;;  %v3550_v37 = vld [vmem:[%s4408_s20 + $0x300] ss:$16 sps:$4 sm:$0xff]   ;;  %s2766_s26 = sshll.u32 %s388_s30, 4  ;;  %s2750_s21 = scalar_lea.sflag [#allocation4], %s4405_s27  ;;  %s4769_s26 = int_to_ptr.vmem [resolvable:$true] %s2766_s26 }
  0xd9   : > { %s4012_s1 = scalar_lea.vmem %s4769_s26, 1024  ;;  %p4869_p1 = scmp.ne.s32.totalorder %s4857_s7, 0 }
  0xda   : > { %p4013_p9 = scmp.ne.s32.totalorder %s4769_s26, %s4012_s1  ;;  %s4115_s24 = smov [#allocation11]  }
  0xdb   : > { %2222 = vmatpush1.bf16.msra.mxu0 %v3461_v38  ;;  %2437 = vmatpush1.bf16.msra.mxu1 %v3462_v39  ;;  %v3553_v38 = vld [vmem:[%s4408_s20 + $0x308] ss:$16 sps:$4 sm:$0xff]   ;;  %v3558_v39 = vld [vmem:[%s4408_s20 + $0x324] ss:$16 sps:$4 sm:$0xff]   ;;  %s4016_s3 = sshll.u32 %s4115_s24, 4  ;;  %s4017_s3 = int_to_ptr.vmem [resolvable:$false] %s4016_s3 }
  0xdc   : > { %2223 = vmatprep.subr.bf16.mxu0 %v3463_v40  ;;  %2438 = vmatprep.subr.bf16.mxu1 %v3465_v41  ;;  %v3561_v40 = vld [vmem:[%s4408_s20 + $0x32c] ss:$16 sps:$4 sm:$0xff]   ;;  %v3556_v41 = vld [vmem:[%s4408_s20 + $0x320] ss:$16 sps:$4 sm:$0xff]   ;;  %p4014_p0 = pnand %p4013_p9, %p4869_p1  ;;  %s4018_s13 = scalar_lea.vmem %s4017_s3, 2048 }
  0xdd   : > { %p4019_p7 = scmp.lt.s32.totalorder %s4769_s26, %s4017_s3  ;;  %p4020_p8 = scmp.lt.s32.totalorder %s4018_s13, %s4012_s1 }
  0xde   : > { %p4015_p13 = pneg %p4014_p0 }
  0xdf   : > { %2224 = vmatpush1.bf16.msra.mxu0 %v3467_v42  ;;  %2439 = vmatpush1.bf16.msra.mxu1 %v3468_v43  ;;  %v3559_v42 = vld [vmem:[%s4408_s20 + $0x328] ss:$16 sps:$4 sm:$0xff]   ;;  %v3564_v43 = vld [vmem:[%s4408_s20 + $0x344] ss:$16 sps:$4 sm:$0xff]   ;;  %p4021_p11 = por %p4020_p8, %p4019_p7 }
  0xe0   : > { %2225 = vmatprep.subr.bf16.mxu0 %v3469_v44  ;;  %2440 = vmatprep.subr.bf16.mxu1 %v3471_v45  ;;  %v3567_v44 = vld [vmem:[%s4408_s20 + $0x34c] ss:$16 sps:$4 sm:$0xff]   ;;  %v3562_v45 = vld [vmem:[%s4408_s20 + $0x340] ss:$16 sps:$4 sm:$0xff]  }
  0xe1   : > { %p4022_p10 = pnand %p4021_p11, %p4015_p13 }
  0xe3   : > { %2226 = vmatpush1.bf16.msra.mxu0 %v3473_v46  ;;  %2441 = vmatpush1.bf16.msra.mxu1 %v3474_v47  ;;  %v3565_v46 = vld [vmem:[%s4408_s20 + $0x348] ss:$16 sps:$4 sm:$0xff]   ;;  %v3570_v47 = vld [vmem:[%s4408_s20 + $0x364] ss:$16 sps:$4 sm:$0xff]  }
  0xe4   : > { %2227 = vmatprep.subr.bf16.mxu0 %v3475_v49  ;;  %2442 = vmatprep.subr.bf16.mxu1 %v3477_v50  ;;  %v3568_v49 = vld [vmem:[%s4408_s20 + $0x360] ss:$16 sps:$4 sm:$0xff]   ;;  %v3571_v50 = vld [vmem:[%s4408_s20 + $0x368] ss:$16 sps:$4 sm:$0xff]  }
  0xe7   : > { %2228 = vmatpush1.bf16.msra.mxu0 %v3479_v51  ;;  %2443 = vmatpush1.bf16.msra.mxu1 %v3480_v52  ;;  %v3576_v51 = vld [vmem:[%s4408_s20 + $0x384] ss:$16 sps:$4 sm:$0xff]   ;;  %v3579_v52 = vld [vmem:[%s4408_s20 + $0x38c] ss:$16 sps:$4 sm:$0xff]  }
  0xe8   : > { %2229 = vmatprep.subr.bf16.mxu0 %v3481_v53  ;;  %2444 = vmatprep.subr.bf16.mxu1 %v3483_v54  ;;  %v3574_v53 = vld [vmem:[%s4408_s20 + $0x380] ss:$16 sps:$4 sm:$0xff]   ;;  %v3577_v54 = vld [vmem:[%s4408_s20 + $0x388] ss:$16 sps:$4 sm:$0xff]  }
  0xeb   : > { %2230 = vmatpush1.bf16.msra.mxu0 %v3485_v55  ;;  %2445 = vmatpush1.bf16.msra.mxu1 %v3486_v56  ;;  %v3582_v55 = vld [vmem:[%s4408_s20 + $0x3a4] ss:$16 sps:$4 sm:$0xff]   ;;  %v3585_v56 = vld [vmem:[%s4408_s20 + $0x3ac] ss:$16 sps:$4 sm:$0xff]  }
  0xec   : > { %2231 = vmatprep.subr.bf16.mxu0 %v3487_v57  ;;  %2446 = vmatprep.subr.bf16.mxu1 %v3489_v58  ;;  %v3580_v57 = vld [vmem:[%s4408_s20 + $0x3a0] ss:$16 sps:$4 sm:$0xff]   ;;  %v3583_v58 = vld [vmem:[%s4408_s20 + $0x3a8] ss:$16 sps:$4 sm:$0xff]  }
  0xef   : > { %2232 = vmatpush1.bf16.msra.mxu0 %v3491_v59  ;;  %2447 = vmatpush1.bf16.msra.mxu1 %v3492_v60  ;;  %v3588_v59 = vld [vmem:[%s4408_s20 + $0x3c4] ss:$16 sps:$4 sm:$0xff]   ;;  %v3591_v60 = vld [vmem:[%s4408_s20 + $0x3cc] ss:$16 sps:$4 sm:$0xff]  }
  0xf0   : > { %2233 = vmatprep.subr.bf16.mxu0 %v3493_v61  ;;  %2448 = vmatprep.subr.bf16.mxu1 %v3495_v62  ;;  %v3586_v61 = vld [vmem:[%s4408_s20 + $0x3c0] ss:$16 sps:$4 sm:$0xff]   ;;  %v3589_v62 = vld [vmem:[%s4408_s20 + $0x3c8] ss:$16 sps:$4 sm:$0xff]  }
  0xf3   : > { %2234 = vmatpush1.bf16.msra.mxu0 %v3497_v63  ;;  %2449 = vmatpush1.bf16.msra.mxu1 %v3498_v0  ;;  %v3594_v63 = vld [vmem:[%s4408_s20 + $0x3e4] ss:$16 sps:$4 sm:$0xff]   ;;  %v3597_v0 = vld [vmem:[%s4408_s20 + $0x3ec] ss:$16 sps:$4 sm:$0xff]  }
  0xf4   : > { %2246 = vmatprep.subr.bf16.mxu0 %v3504_v1  ;;  %2461 = vmatprep.subr.bf16.mxu1 %v3507_v2  ;;  %v3592_v1 = vld [vmem:[%s4408_s20 + $0x3e0] ss:$16 sps:$4 sm:$0xff]   ;;  %v3595_v2 = vld [vmem:[%s4408_s20 + $0x3e8] ss:$16 sps:$4 sm:$0xff]  }
  0xf6   : > { %2236 = vmatmul.mubr.bf16.vlgmr.msra.gmra.mrb[0].mxu0 %v3499_v3  ;;  %2451 = vmatmul.mubr.bf16.vlgmr.msra.gmra.mrb[0].mxu1 %v3499_v3  ;;  %v3603_v3 = vld [vmem:[%s4408_s20 + $0x404] ss:$16 sps:$4 sm:$0xff]  }
  0xf7   : > { %2247 = vmatpush1.bf16.msra.mxu0 %v3502_v4  ;;  %2462 = vmatpush1.bf16.msra.mxu1 %v3505_v5  ;;  %v3606_v4 = vld [vmem:[%s4408_s20 + $0x40c] ss:$16 sps:$4 sm:$0xff]   ;;  %v3598_v5 = vld [vmem:[#allocation2 + $0x8] ss:$36 sps:$4 sm:$0xff]  }
  0xf8   : > { %2248 = vmatprep.subr.bf16.mxu0 %v3510_v6  ;;  %2463 = vmatprep.subr.bf16.mxu1 %v3513_v7  ;;  %v3601_v6 = vld [vmem:[%s4408_s20 + $0x400] ss:$16 sps:$4 sm:$0xff]   ;;  %v3604_v7 = vld [vmem:[%s4408_s20 + $0x408] ss:$16 sps:$4 sm:$0xff]  }
  0xf9   : > { %2278 = vmatprep.mubr.bf16.mxu0 %v3600_v30  ;;  %2493 = vmatprep.mubr.bf16.mxu1 %v3600_v30  ;;  %v3642_v30 = vld [vmem:[%s4408_s20 + $0x4cc] ss:$16 sps:$4 sm:$0xff]  }
  0xfb   : > { %2249 = vmatpush1.bf16.msra.mxu0 %v3508_v8  ;;  %2464 = vmatpush1.bf16.msra.mxu1 %v3511_v9  ;;  %v3609_v8 = vld [vmem:[%s4408_s20 + $0x424] ss:$16 sps:$4 sm:$0xff]   ;;  %v3612_v9 = vld [vmem:[%s4408_s20 + $0x42c] ss:$16 sps:$4 sm:$0xff]  }
  0xfc   : > { %2250 = vmatprep.subr.bf16.mxu0 %v3516_v10  ;;  %2465 = vmatprep.subr.bf16.mxu1 %v3519_v11  ;;  %v3607_v10 = vld [vmem:[%s4408_s20 + $0x420] ss:$16 sps:$4 sm:$0xff]   ;;  %v3610_v11 = vld [vmem:[%s4408_s20 + $0x428] ss:$16 sps:$4 sm:$0xff]  }
  0xff   : > { %2251 = vmatpush1.bf16.msra.mxu0 %v3514_v12  ;;  %2466 = vmatpush1.bf16.msra.mxu1 %v3517_v13  ;;  %v3699_v12 = vld [vmem:[#allocation2 + $0x14] ss:$36 sps:$4 sm:$0xff]   ;;  %v3615_v13 = vld [vmem:[%s4408_s20 + $0x444] ss:$16 sps:$4 sm:$0xff]  }
 0x100   : > { %2252 = vmatprep.subr.bf16.mxu0 %v3522_v14  ;;  %2467 = vmatprep.subr.bf16.mxu1 %v3525_v15  ;;  %v3618_v14 = vld [vmem:[%s4408_s20 + $0x44c] ss:$16 sps:$4 sm:$0xff]   ;;  %v3613_v15 = vld [vmem:[%s4408_s20 + $0x440] ss:$16 sps:$4 sm:$0xff]  }
 0x103   : > { %2253 = vmatpush1.bf16.msra.mxu0 %v3520_v16  ;;  %2468 = vmatpush1.bf16.msra.mxu1 %v3523_v17  ;;  %v3616_v16 = vld [vmem:[%s4408_s20 + $0x448] ss:$16 sps:$4 sm:$0xff]   ;;  %v3621_v17 = vld [vmem:[%s4408_s20 + $0x464] ss:$16 sps:$4 sm:$0xff]  }
 0x104   : > { %2254 = vmatprep.subr.bf16.mxu0 %v3528_v18  ;;  %2469 = vmatprep.subr.bf16.mxu1 %v3531_v19  ;;  %v3624_v18 = vld [vmem:[%s4408_s20 + $0x46c] ss:$16 sps:$4 sm:$0xff]   ;;  %v3619_v19 = vld [vmem:[%s4408_s20 + $0x460] ss:$16 sps:$4 sm:$0xff]  }
 0x107   : > { %2255 = vmatpush1.bf16.msra.mxu0 %v3526_v20  ;;  %2470 = vmatpush1.bf16.msra.mxu1 %v3529_v21  ;;  %v3622_v20 = vld [vmem:[%s4408_s20 + $0x468] ss:$16 sps:$4 sm:$0xff]   ;;  %v3627_v21 = vld [vmem:[%s4408_s20 + $0x484] ss:$16 sps:$4 sm:$0xff]  }
 0x108   : > { %2256 = vmatprep.subr.bf16.mxu0 %v3534_v22  ;;  %2471 = vmatprep.subr.bf16.mxu1 %v3537_v23  ;;  %v3630_v22 = vld [vmem:[%s4408_s20 + $0x48c] ss:$16 sps:$4 sm:$0xff]   ;;  %v3625_v23 = vld [vmem:[%s4408_s20 + $0x480] ss:$16 sps:$4 sm:$0xff]  }
 0x10b   : > { %2257 = vmatpush1.bf16.msra.mxu0 %v3532_v24  ;;  %2472 = vmatpush1.bf16.msra.mxu1 %v3535_v25  ;;  %v3628_v24 = vld [vmem:[%s4408_s20 + $0x488] ss:$16 sps:$4 sm:$0xff]   ;;  %v3633_v25 = vld [vmem:[%s4408_s20 + $0x4a4] ss:$16 sps:$4 sm:$0xff]  }
 0x10c   : > { %2258 = vmatprep.subr.bf16.mxu0 %v3540_v26  ;;  %2473 = vmatprep.subr.bf16.mxu1 %v3543_v27  ;;  %v3636_v26 = vld [vmem:[%s4408_s20 + $0x4ac] ss:$16 sps:$4 sm:$0xff]   ;;  %v3631_v27 = vld [vmem:[%s4408_s20 + $0x4a0] ss:$16 sps:$4 sm:$0xff]  }
 0x10f   : > { %2259 = vmatpush1.bf16.msra.mxu0 %v3538_v28  ;;  %2474 = vmatpush1.bf16.msra.mxu1 %v3541_v29  ;;  %v3634_v28 = vld [vmem:[%s4408_s20 + $0x4a8] ss:$16 sps:$4 sm:$0xff]   ;;  %v3639_v29 = vld [vmem:[%s4408_s20 + $0x4c4] ss:$16 sps:$4 sm:$0xff]  }
 0x110   : > { %2260 = vmatprep.subr.bf16.mxu0 %v3546_v31  ;;  %2475 = vmatprep.subr.bf16.mxu1 %v3549_v32  ;;  %v3637_v31 = vld [vmem:[%s4408_s20 + $0x4c0] ss:$16 sps:$4 sm:$0xff]   ;;  %v3640_v32 = vld [vmem:[%s4408_s20 + $0x4c8] ss:$16 sps:$4 sm:$0xff]  }
 0x113   : > { %2261 = vmatpush1.bf16.msra.mxu0 %v3544_v33  ;;  %2476 = vmatpush1.bf16.msra.mxu1 %v3547_v34  ;;  %v3645_v33 = vld [vmem:[%s4408_s20 + $0x4e4] ss:$16 sps:$4 sm:$0xff]   ;;  %v3648_v34 = vld [vmem:[%s4408_s20 + $0x4ec] ss:$16 sps:$4 sm:$0xff]  }
 0x114   : > { %2262 = vmatprep.subr.bf16.mxu0 %v3552_v35  ;;  %2477 = vmatprep.subr.bf16.mxu1 %v3555_v36  ;;  %v3643_v35 = vld [vmem:[%s4408_s20 + $0x4e0] ss:$16 sps:$4 sm:$0xff]   ;;  %v3646_v36 = vld [vmem:[%s4408_s20 + $0x4e8] ss:$16 sps:$4 sm:$0xff]  }
 0x117   : > { %2263 = vmatpush1.bf16.msra.mxu0 %v3550_v37  ;;  %2478 = vmatpush1.bf16.msra.mxu1 %v3553_v38  ;;  %v3651_v37 = vld [vmem:[%s4408_s20 + $0x504] ss:$16 sps:$4 sm:$0xff]   ;;  %v3654_v38 = vld [vmem:[%s4408_s20 + $0x50c] ss:$16 sps:$4 sm:$0xff]  }
 0x118   : > { %2264 = vmatprep.subr.bf16.mxu0 %v3558_v39  ;;  %2479 = vmatprep.subr.bf16.mxu1 %v3561_v40  ;;  %v3649_v39 = vld [vmem:[%s4408_s20 + $0x500] ss:$16 sps:$4 sm:$0xff]   ;;  %v3652_v40 = vld [vmem:[%s4408_s20 + $0x508] ss:$16 sps:$4 sm:$0xff]  }
 0x11b   : > { %2265 = vmatpush1.bf16.msra.mxu0 %v3556_v41  ;;  %2480 = vmatpush1.bf16.msra.mxu1 %v3559_v42  ;;  %v3657_v41 = vld [vmem:[%s4408_s20 + $0x524] ss:$16 sps:$4 sm:$0xff]   ;;  %v3660_v42 = vld [vmem:[%s4408_s20 + $0x52c] ss:$16 sps:$4 sm:$0xff]  }
 0x11c   : > { %2266 = vmatprep.subr.bf16.mxu0 %v3564_v43  ;;  %2481 = vmatprep.subr.bf16.mxu1 %v3567_v44  ;;  %v3655_v43 = vld [vmem:[%s4408_s20 + $0x520] ss:$16 sps:$4 sm:$0xff]   ;;  %v3658_v44 = vld [vmem:[%s4408_s20 + $0x528] ss:$16 sps:$4 sm:$0xff]  }
 0x11f   : > { %2267 = vmatpush1.bf16.msra.mxu0 %v3562_v45  ;;  %2482 = vmatpush1.bf16.msra.mxu1 %v3565_v46  ;;  %v3663_v45 = vld [vmem:[%s4408_s20 + $0x544] ss:$16 sps:$4 sm:$0xff]   ;;  %v3666_v46 = vld [vmem:[%s4408_s20 + $0x54c] ss:$16 sps:$4 sm:$0xff]  }
 0x120   : > { %2268 = vmatprep.subr.bf16.mxu0 %v3570_v47  ;;  %2483 = vmatprep.subr.bf16.mxu1 %v3573_v48  ;;  %v3661_v47 = vld [vmem:[%s4408_s20 + $0x540] ss:$16 sps:$4 sm:$0xff]   ;;  %v3664_v48 = vld [vmem:[%s4408_s20 + $0x548] ss:$16 sps:$4 sm:$0xff]  }
 0x123   : > { %2269 = vmatpush1.bf16.msra.mxu0 %v3568_v49  ;;  %2484 = vmatpush1.bf16.msra.mxu1 %v3571_v50  ;;  %v3669_v49 = vld [vmem:[%s4408_s20 + $0x564] ss:$16 sps:$4 sm:$0xff]   ;;  %v3672_v50 = vld [vmem:[%s4408_s20 + $0x56c] ss:$16 sps:$4 sm:$0xff]  }
 0x124   : > { %2270 = vmatprep.subr.bf16.mxu0 %v3576_v51  ;;  %2485 = vmatprep.subr.bf16.mxu1 %v3579_v52  ;;  %v3667_v51 = vld [vmem:[%s4408_s20 + $0x560] ss:$16 sps:$4 sm:$0xff]   ;;  %v3670_v52 = vld [vmem:[%s4408_s20 + $0x568] ss:$16 sps:$4 sm:$0xff]  }
 0x127   : > { %2271 = vmatpush1.bf16.msra.mxu0 %v3574_v53  ;;  %2486 = vmatpush1.bf16.msra.mxu1 %v3577_v54  ;;  %v3675_v53 = vld [vmem:[%s4408_s20 + $0x584] ss:$16 sps:$4 sm:$0xff]   ;;  %v3678_v54 = vld [vmem:[%s4408_s20 + $0x58c] ss:$16 sps:$4 sm:$0xff]  }
 0x128   : > { %2272 = vmatprep.subr.bf16.mxu0 %v3582_v55  ;;  %2487 = vmatprep.subr.bf16.mxu1 %v3585_v56  ;;  %v3673_v55 = vld [vmem:[%s4408_s20 + $0x580] ss:$16 sps:$4 sm:$0xff]   ;;  %v3676_v56 = vld [vmem:[%s4408_s20 + $0x588] ss:$16 sps:$4 sm:$0xff]  }
 0x12b   : > { %2273 = vmatpush1.bf16.msra.mxu0 %v3580_v57  ;;  %2488 = vmatpush1.bf16.msra.mxu1 %v3583_v58  ;;  %v3681_v57 = vld [vmem:[%s4408_s20 + $0x5a4] ss:$16 sps:$4 sm:$0xff]   ;;  %v3684_v58 = vld [vmem:[%s4408_s20 + $0x5ac] ss:$16 sps:$4 sm:$0xff]  }
 0x12c   : > { %2274 = vmatprep.subr.bf16.mxu0 %v3588_v59  ;;  %2489 = vmatprep.subr.bf16.mxu1 %v3591_v60  ;;  %v3679_v59 = vld [vmem:[%s4408_s20 + $0x5a0] ss:$16 sps:$4 sm:$0xff]   ;;  %v3682_v60 = vld [vmem:[%s4408_s20 + $0x5a8] ss:$16 sps:$4 sm:$0xff]  }
 0x12f   : > { %2275 = vmatpush1.bf16.msra.mxu0 %v3586_v61  ;;  %2490 = vmatpush1.bf16.msra.mxu1 %v3589_v62  ;;  %v3687_v61 = vld [vmem:[%s4408_s20 + $0x5c4] ss:$16 sps:$4 sm:$0xff]   ;;  %v3690_v62 = vld [vmem:[%s4408_s20 + $0x5cc] ss:$16 sps:$4 sm:$0xff]  }
 0x130   : > { %2276 = vmatprep.subr.bf16.mxu0 %v3594_v63  ;;  %2491 = vmatprep.subr.bf16.mxu1 %v3597_v0  ;;  %v3685_v63 = vld [vmem:[%s4408_s20 + $0x5c0] ss:$16 sps:$4 sm:$0xff]   ;;  %v3688_v0 = vld [vmem:[%s4408_s20 + $0x5c8] ss:$16 sps:$4 sm:$0xff]  }
 0x133   : > { %2277 = vmatpush1.bf16.msra.mxu0 %v3592_v1  ;;  %2492 = vmatpush1.bf16.msra.mxu1 %v3595_v2  ;;  %v3693_v1 = vld [vmem:[%s4408_s20 + $0x5e4] ss:$16 sps:$4 sm:$0xff]   ;;  %v3696_v2 = vld [vmem:[%s4408_s20 + $0x5ec] ss:$16 sps:$4 sm:$0xff]  }
 0x134   : > { %2289 = vmatprep.subr.bf16.mxu0 %v3603_v3  ;;  %2504 = vmatprep.subr.bf16.mxu1 %v3606_v4  ;;  %v3691_v3 = vld [vmem:[%s4408_s20 + $0x5e0] ss:$16 sps:$4 sm:$0xff]   ;;  %v3694_v4 = vld [vmem:[%s4408_s20 + $0x5e8] ss:$16 sps:$4 sm:$0xff]  }
 0x136   : > { %2279 = vmatmul.mubr.bf16.vlgmr.msra.gmra.mrb[0].mxu0 %v3598_v5  ;;  %2494 = vmatmul.mubr.bf16.vlgmr.msra.gmra.mrb[0].mxu1 %v3598_v5  ;;  %v3702_v5 = vld [vmem:[%s4408_s20 + $0x604] ss:$16 sps:$4 sm:$0xff]  }
 0x137   : > { %2290 = vmatpush1.bf16.msra.mxu0 %v3601_v6  ;;  %2505 = vmatpush1.bf16.msra.mxu1 %v3604_v7  ;;  %v3705_v6 = vld [vmem:[%s4408_s20 + $0x60c] ss:$16 sps:$4 sm:$0xff]  }
 0x138   : > { %2291 = vmatprep.subr.bf16.mxu0 %v3609_v8  ;;  %2506 = vmatprep.subr.bf16.mxu1 %v3612_v9  ;;  %v3697_v7 = vld [vmem:[#allocation2 + $0x10] ss:$36 sps:$4 sm:$0xff]   ;;  %v3700_v8 = vld [vmem:[%s4408_s20 + $0x600] ss:$16 sps:$4 sm:$0xff]  }
 0x139   : > { %2321 = vmatprep.mubr.bf16.mxu0 %v3699_v12  ;;  %2536 = vmatprep.mubr.bf16.mxu1 %v3699_v12  ;;  %v3703_v9 = vld [vmem:[%s4408_s20 + $0x608] ss:$16 sps:$4 sm:$0xff]  }
 0x13a   : > { %v3798_v12 = vld [vmem:[#allocation2 + $0x1c] ss:$36 sps:$4 sm:$0xff]  }
 0x13b   : > { %2292 = vmatpush1.bf16.msra.mxu0 %v3607_v10  ;;  %2507 = vmatpush1.bf16.msra.mxu1 %v3610_v11  ;;  %v3708_v10 = vld [vmem:[%s4408_s20 + $0x624] ss:$16 sps:$4 sm:$0xff]   ;;  %v3711_v11 = vld [vmem:[%s4408_s20 + $0x62c] ss:$16 sps:$4 sm:$0xff]  }
 0x13c   : > { %2293 = vmatprep.subr.bf16.mxu0 %v3615_v13  ;;  %2508 = vmatprep.subr.bf16.mxu1 %v3618_v14  ;;  %v3706_v13 = vld [vmem:[%s4408_s20 + $0x620] ss:$16 sps:$4 sm:$0xff]   ;;  %v3709_v14 = vld [vmem:[%s4408_s20 + $0x628] ss:$16 sps:$4 sm:$0xff]  }
 0x13f   : > { %2294 = vmatpush1.bf16.msra.mxu0 %v3613_v15  ;;  %2509 = vmatpush1.bf16.msra.mxu1 %v3616_v16  ;;  %v3714_v15 = vld [vmem:[%s4408_s20 + $0x644] ss:$16 sps:$4 sm:$0xff]   ;;  %v3717_v16 = vld [vmem:[%s4408_s20 + $0x64c] ss:$16 sps:$4 sm:$0xff]  }
 0x140   : > { %2295 = vmatprep.subr.bf16.mxu0 %v3621_v17  ;;  %2510 = vmatprep.subr.bf16.mxu1 %v3624_v18  ;;  %v3712_v17 = vld [vmem:[%s4408_s20 + $0x640] ss:$16 sps:$4 sm:$0xff]   ;;  %v3715_v18 = vld [vmem:[%s4408_s20 + $0x648] ss:$16 sps:$4 sm:$0xff]  }
 0x143   : > { %2296 = vmatpush1.bf16.msra.mxu0 %v3619_v19  ;;  %2511 = vmatpush1.bf16.msra.mxu1 %v3622_v20  ;;  %v3720_v19 = vld [vmem:[%s4408_s20 + $0x664] ss:$16 sps:$4 sm:$0xff]   ;;  %v3723_v20 = vld [vmem:[%s4408_s20 + $0x66c] ss:$16 sps:$4 sm:$0xff]  }
 0x144   : > { %2297 = vmatprep.subr.bf16.mxu0 %v3627_v21  ;;  %2512 = vmatprep.subr.bf16.mxu1 %v3630_v22  ;;  %v3718_v21 = vld [vmem:[%s4408_s20 + $0x660] ss:$16 sps:$4 sm:$0xff]   ;;  %v3721_v22 = vld [vmem:[%s4408_s20 + $0x668] ss:$16 sps:$4 sm:$0xff]  }
 0x147   : > { %2298 = vmatpush1.bf16.msra.mxu0 %v3625_v23  ;;  %2513 = vmatpush1.bf16.msra.mxu1 %v3628_v24  ;;  %v3726_v23 = vld [vmem:[%s4408_s20 + $0x684] ss:$16 sps:$4 sm:$0xff]   ;;  %v3729_v24 = vld [vmem:[%s4408_s20 + $0x68c] ss:$16 sps:$4 sm:$0xff]  }
 0x148   : > { %2299 = vmatprep.subr.bf16.mxu0 %v3633_v25  ;;  %2514 = vmatprep.subr.bf16.mxu1 %v3636_v26  ;;  %v3724_v25 = vld [vmem:[%s4408_s20 + $0x680] ss:$16 sps:$4 sm:$0xff]   ;;  %v3727_v26 = vld [vmem:[%s4408_s20 + $0x688] ss:$16 sps:$4 sm:$0xff]  }
 0x14b   : > { %2300 = vmatpush1.bf16.msra.mxu0 %v3631_v27  ;;  %2515 = vmatpush1.bf16.msra.mxu1 %v3634_v28  ;;  %v3732_v27 = vld [vmem:[%s4408_s20 + $0x6a4] ss:$16 sps:$4 sm:$0xff]   ;;  %v3735_v28 = vld [vmem:[%s4408_s20 + $0x6ac] ss:$16 sps:$4 sm:$0xff]  }
 0x14c   : > { %2301 = vmatprep.subr.bf16.mxu0 %v3639_v29  ;;  %2516 = vmatprep.subr.bf16.mxu1 %v3642_v30  ;;  %v3730_v29 = vld [vmem:[%s4408_s20 + $0x6a0] ss:$16 sps:$4 sm:$0xff]   ;;  %v3733_v30 = vld [vmem:[%s4408_s20 + $0x6a8] ss:$16 sps:$4 sm:$0xff]  }
 0x14f   : > { %2302 = vmatpush1.bf16.msra.mxu0 %v3637_v31  ;;  %2517 = vmatpush1.bf16.msra.mxu1 %v3640_v32  ;;  %v3738_v31 = vld [vmem:[%s4408_s20 + $0x6c4] ss:$16 sps:$4 sm:$0xff]   ;;  %v3741_v32 = vld [vmem:[%s4408_s20 + $0x6cc] ss:$16 sps:$4 sm:$0xff]  }
 0x150   : > { %2303 = vmatprep.subr.bf16.mxu0 %v3645_v33  ;;  %2518 = vmatprep.subr.bf16.mxu1 %v3648_v34  ;;  %v3736_v33 = vld [vmem:[%s4408_s20 + $0x6c0] ss:$16 sps:$4 sm:$0xff]   ;;  %v3739_v34 = vld [vmem:[%s4408_s20 + $0x6c8] ss:$16 sps:$4 sm:$0xff]  }
 0x153   : > { %2304 = vmatpush1.bf16.msra.mxu0 %v3643_v35  ;;  %2519 = vmatpush1.bf16.msra.mxu1 %v3646_v36  ;;  %v3744_v35 = vld [vmem:[%s4408_s20 + $0x6e4] ss:$16 sps:$4 sm:$0xff]   ;;  %v3747_v36 = vld [vmem:[%s4408_s20 + $0x6ec] ss:$16 sps:$4 sm:$0xff]  }
 0x154   : > { %2305 = vmatprep.subr.bf16.mxu0 %v3651_v37  ;;  %2520 = vmatprep.subr.bf16.mxu1 %v3654_v38  ;;  %v3742_v37 = vld [vmem:[%s4408_s20 + $0x6e0] ss:$16 sps:$4 sm:$0xff]   ;;  %v3745_v38 = vld [vmem:[%s4408_s20 + $0x6e8] ss:$16 sps:$4 sm:$0xff]  }
 0x157   : > { %2306 = vmatpush1.bf16.msra.mxu0 %v3649_v39  ;;  %2521 = vmatpush1.bf16.msra.mxu1 %v3652_v40  ;;  %v3750_v39 = vld [vmem:[%s4408_s20 + $0x704] ss:$16 sps:$4 sm:$0xff]   ;;  %v3753_v40 = vld [vmem:[%s4408_s20 + $0x70c] ss:$16 sps:$4 sm:$0xff]  }
 0x158   : > { %2307 = vmatprep.subr.bf16.mxu0 %v3657_v41  ;;  %2522 = vmatprep.subr.bf16.mxu1 %v3660_v42  ;;  %v3748_v41 = vld [vmem:[%s4408_s20 + $0x700] ss:$16 sps:$4 sm:$0xff]   ;;  %v3751_v42 = vld [vmem:[%s4408_s20 + $0x708] ss:$16 sps:$4 sm:$0xff]  }
 0x15b   : > { %2308 = vmatpush1.bf16.msra.mxu0 %v3655_v43  ;;  %2523 = vmatpush1.bf16.msra.mxu1 %v3658_v44  ;;  %v3756_v43 = vld [vmem:[%s4408_s20 + $0x724] ss:$16 sps:$4 sm:$0xff]   ;;  %v3759_v44 = vld [vmem:[%s4408_s20 + $0x72c] ss:$16 sps:$4 sm:$0xff]  }
 0x15c   : > { %2309 = vmatprep.subr.bf16.mxu0 %v3663_v45  ;;  %2524 = vmatprep.subr.bf16.mxu1 %v3666_v46  ;;  %v3754_v45 = vld [vmem:[%s4408_s20 + $0x720] ss:$16 sps:$4 sm:$0xff]   ;;  %v3757_v46 = vld [vmem:[%s4408_s20 + $0x728] ss:$16 sps:$4 sm:$0xff]  }
 0x15f   : > { %2310 = vmatpush1.bf16.msra.mxu0 %v3661_v47  ;;  %2525 = vmatpush1.bf16.msra.mxu1 %v3664_v48  ;;  %v3762_v47 = vld [vmem:[%s4408_s20 + $0x744] ss:$16 sps:$4 sm:$0xff]   ;;  %v3765_v48 = vld [vmem:[%s4408_s20 + $0x74c] ss:$16 sps:$4 sm:$0xff]  }
 0x160   : > { %2311 = vmatprep.subr.bf16.mxu0 %v3669_v49  ;;  %2526 = vmatprep.subr.bf16.mxu1 %v3672_v50  ;;  %v3760_v49 = vld [vmem:[%s4408_s20 + $0x740] ss:$16 sps:$4 sm:$0xff]   ;;  %v3763_v50 = vld [vmem:[%s4408_s20 + $0x748] ss:$16 sps:$4 sm:$0xff]  }
 0x163   : > { %2312 = vmatpush1.bf16.msra.mxu0 %v3667_v51  ;;  %2527 = vmatpush1.bf16.msra.mxu1 %v3670_v52  ;;  %v3768_v51 = vld [vmem:[%s4408_s20 + $0x764] ss:$16 sps:$4 sm:$0xff]   ;;  %v3771_v52 = vld [vmem:[%s4408_s20 + $0x76c] ss:$16 sps:$4 sm:$0xff]  }
 0x164   : > { %2313 = vmatprep.subr.bf16.mxu0 %v3675_v53  ;;  %2528 = vmatprep.subr.bf16.mxu1 %v3678_v54  ;;  %v3766_v53 = vld [vmem:[%s4408_s20 + $0x760] ss:$16 sps:$4 sm:$0xff]   ;;  %v3769_v54 = vld [vmem:[%s4408_s20 + $0x768] ss:$16 sps:$4 sm:$0xff]  }
 0x167   : > { %2314 = vmatpush1.bf16.msra.mxu0 %v3673_v55  ;;  %2529 = vmatpush1.bf16.msra.mxu1 %v3676_v56  ;;  %v3774_v55 = vld [vmem:[%s4408_s20 + $0x784] ss:$16 sps:$4 sm:$0xff]   ;;  %v3777_v56 = vld [vmem:[%s4408_s20 + $0x78c] ss:$16 sps:$4 sm:$0xff]  }
 0x168   : > { %2315 = vmatprep.subr.bf16.mxu0 %v3681_v57  ;;  %2530 = vmatprep.subr.bf16.mxu1 %v3684_v58  ;;  %v3772_v57 = vld [vmem:[%s4408_s20 + $0x780] ss:$16 sps:$4 sm:$0xff]   ;;  %v3775_v58 = vld [vmem:[%s4408_s20 + $0x788] ss:$16 sps:$4 sm:$0xff]  }
 0x16b   : > { %2316 = vmatpush1.bf16.msra.mxu0 %v3679_v59  ;;  %2531 = vmatpush1.bf16.msra.mxu1 %v3682_v60  ;;  %v3780_v59 = vld [vmem:[%s4408_s20 + $0x7a4] ss:$16 sps:$4 sm:$0xff]   ;;  %v3783_v60 = vld [vmem:[%s4408_s20 + $0x7ac] ss:$16 sps:$4 sm:$0xff]  }
 0x16c   : > { %2317 = vmatprep.subr.bf16.mxu0 %v3687_v61  ;;  %2532 = vmatprep.subr.bf16.mxu1 %v3690_v62  ;;  %v3778_v61 = vld [vmem:[%s4408_s20 + $0x7a0] ss:$16 sps:$4 sm:$0xff]   ;;  %v3781_v62 = vld [vmem:[%s4408_s20 + $0x7a8] ss:$16 sps:$4 sm:$0xff]  }
 0x16f   : > { %2318 = vmatpush1.bf16.msra.mxu0 %v3685_v63  ;;  %2533 = vmatpush1.bf16.msra.mxu1 %v3688_v0  ;;  %v3786_v63 = vld [vmem:[%s4408_s20 + $0x7c4] ss:$16 sps:$4 sm:$0xff]   ;;  %v3789_v0 = vld [vmem:[%s4408_s20 + $0x7cc] ss:$16 sps:$4 sm:$0xff]  }
 0x170   : > { %2319 = vmatprep.subr.bf16.mxu0 %v3693_v1  ;;  %2534 = vmatprep.subr.bf16.mxu1 %v3696_v2  ;;  %v3784_v1 = vld [vmem:[%s4408_s20 + $0x7c0] ss:$16 sps:$4 sm:$0xff]   ;;  %v3787_v2 = vld [vmem:[%s4408_s20 + $0x7c8] ss:$16 sps:$4 sm:$0xff]  }
 0x173   : > { %2320 = vmatpush1.bf16.msra.mxu0 %v3691_v3  ;;  %2535 = vmatpush1.bf16.msra.mxu1 %v3694_v4  ;;  %v3792_v3 = vld [vmem:[%s4408_s20 + $0x7e4] ss:$16 sps:$4 sm:$0xff]   ;;  %v3795_v4 = vld [vmem:[%s4408_s20 + $0x7ec] ss:$16 sps:$4 sm:$0xff]  }
 0x174   : > { %2332 = vmatprep.subr.bf16.mxu0 %v3702_v5  ;;  %2547 = vmatprep.subr.bf16.mxu1 %v3705_v6  ;;  %v3790_v5 = vld [vmem:[%s4408_s20 + $0x7e0] ss:$16 sps:$4 sm:$0xff]   ;;  %v3793_v6 = vld [vmem:[%s4408_s20 + $0x7e8] ss:$16 sps:$4 sm:$0xff]  }
 0x176   : > { %2322 = vmatmul.mubr.bf16.vlgmr.msra.gmra.mrb[0].mxu0 %v3697_v7  ;;  %2537 = vmatmul.mubr.bf16.vlgmr.msra.gmra.mrb[0].mxu1 %v3697_v7  ;;  %v3801_v7 = vld [vmem:[%s4408_s20 + $0x804] ss:$16 sps:$4 sm:$0xff]  }
 0x177   : > { %2333 = vmatpush1.bf16.msra.mxu0 %v3700_v8  ;;  %2548 = vmatpush1.bf16.msra.mxu1 %v3703_v9  ;;  %v3804_v8 = vld [vmem:[%s4408_s20 + $0x80c] ss:$16 sps:$4 sm:$0xff]   ;;  %v3796_v9 = vld [vmem:[#allocation2 + $0x18] ss:$36 sps:$4 sm:$0xff]  }
 0x178   : > { %2334 = vmatprep.subr.bf16.mxu0 %v3708_v10  ;;  %2549 = vmatprep.subr.bf16.mxu1 %v3711_v11  ;;  %v3799_v10 = vld [vmem:[%s4408_s20 + $0x800] ss:$16 sps:$4 sm:$0xff]   ;;  %v3802_v11 = vld [vmem:[%s4408_s20 + $0x808] ss:$16 sps:$4 sm:$0xff]  }
 0x179   : > { %2364 = vmatprep.mubr.bf16.mxu0 %v3798_v12  ;;  %2579 = vmatprep.mubr.bf16.mxu1 %v3798_v12  ;;  %v3807_v12 = vld [vmem:[%s4408_s20 + $0x824] ss:$16 sps:$4 sm:$0xff]  }
 0x17b   : > { %2335 = vmatpush1.bf16.msra.mxu0 %v3706_v13  ;;  %2550 = vmatpush1.bf16.msra.mxu1 %v3709_v14  ;;  %v3810_v13 = vld [vmem:[%s4408_s20 + $0x82c] ss:$16 sps:$4 sm:$0xff]   ;;  %v3805_v14 = vld [vmem:[%s4408_s20 + $0x820] ss:$16 sps:$4 sm:$0xff]  }
 0x17c   : > { %2336 = vmatprep.subr.bf16.mxu0 %v3714_v15  ;;  %2551 = vmatprep.subr.bf16.mxu1 %v3717_v16  ;;  %v3808_v15 = vld [vmem:[%s4408_s20 + $0x828] ss:$16 sps:$4 sm:$0xff]   ;;  %v3813_v16 = vld [vmem:[%s4408_s20 + $0x844] ss:$16 sps:$4 sm:$0xff]  }
 0x17f   : > { %2337 = vmatpush1.bf16.msra.mxu0 %v3712_v17  ;;  %2552 = vmatpush1.bf16.msra.mxu1 %v3715_v18  ;;  %v3816_v17 = vld [vmem:[%s4408_s20 + $0x84c] ss:$16 sps:$4 sm:$0xff]   ;;  %v4114_v18 = vmov 0  }
 0x180   : > { %2338 = vmatprep.subr.bf16.mxu0 %v3720_v19  ;;  %2553 = vmatprep.subr.bf16.mxu1 %v3723_v20  ;;  %v3811_v19 = vld [vmem:[%s4408_s20 + $0x840] ss:$16 sps:$4 sm:$0xff]   ;;  %v3814_v20 = vld [vmem:[%s4408_s20 + $0x848] ss:$16 sps:$4 sm:$0xff]  }
 0x183   : > { %2339 = vmatpush1.bf16.msra.mxu0 %v3718_v21  ;;  %2554 = vmatpush1.bf16.msra.mxu1 %v3721_v22  ;;  %v3819_v21 = vld [vmem:[%s4408_s20 + $0x864] ss:$16 sps:$4 sm:$0xff]   ;;  %v3822_v22 = vld [vmem:[%s4408_s20 + $0x86c] ss:$16 sps:$4 sm:$0xff]  }
 0x184   : > { %2340 = vmatprep.subr.bf16.mxu0 %v3726_v23  ;;  %2555 = vmatprep.subr.bf16.mxu1 %v3729_v24  ;;  %v3817_v23 = vld [vmem:[%s4408_s20 + $0x860] ss:$16 sps:$4 sm:$0xff]   ;;  %v3820_v24 = vld [vmem:[%s4408_s20 + $0x868] ss:$16 sps:$4 sm:$0xff]  }
 0x187   : > { %2341 = vmatpush1.bf16.msra.mxu0 %v3724_v25  ;;  %2556 = vmatpush1.bf16.msra.mxu1 %v3727_v26  ;;  %v3825_v25 = vld [vmem:[%s4408_s20 + $0x884] ss:$16 sps:$4 sm:$0xff]   ;;  %v3828_v26 = vld [vmem:[%s4408_s20 + $0x88c] ss:$16 sps:$4 sm:$0xff]  }
 0x188   : > { %2342 = vmatprep.subr.bf16.mxu0 %v3732_v27  ;;  %2557 = vmatprep.subr.bf16.mxu1 %v3735_v28  ;;  %v3823_v27 = vld [vmem:[%s4408_s20 + $0x880] ss:$16 sps:$4 sm:$0xff]   ;;  %v3826_v28 = vld [vmem:[%s4408_s20 + $0x888] ss:$16 sps:$4 sm:$0xff]  }
 0x18b   : > { %2343 = vmatpush1.bf16.msra.mxu0 %v3730_v29  ;;  %2558 = vmatpush1.bf16.msra.mxu1 %v3733_v30  ;;  %v3831_v29 = vld [vmem:[%s4408_s20 + $0x8a4] ss:$16 sps:$4 sm:$0xff]   ;;  %v3834_v30 = vld [vmem:[%s4408_s20 + $0x8ac] ss:$16 sps:$4 sm:$0xff]  }
 0x18c   : > { %2344 = vmatprep.subr.bf16.mxu0 %v3738_v31  ;;  %2559 = vmatprep.subr.bf16.mxu1 %v3741_v32  ;;  %v3829_v31 = vld [vmem:[%s4408_s20 + $0x8a0] ss:$16 sps:$4 sm:$0xff]   ;;  %v3832_v32 = vld [vmem:[%s4408_s20 + $0x8a8] ss:$16 sps:$4 sm:$0xff]  }
 0x18f   : > { %2345 = vmatpush1.bf16.msra.mxu0 %v3736_v33  ;;  %2560 = vmatpush1.bf16.msra.mxu1 %v3739_v34  ;;  %v3837_v33 = vld [vmem:[%s4408_s20 + $0x8c4] ss:$16 sps:$4 sm:$0xff]   ;;  %v3840_v34 = vld [vmem:[%s4408_s20 + $0x8cc] ss:$16 sps:$4 sm:$0xff]  }
 0x190   : > { %2346 = vmatprep.subr.bf16.mxu0 %v3744_v35  ;;  %2561 = vmatprep.subr.bf16.mxu1 %v3747_v36  ;;  %v3835_v35 = vld [vmem:[%s4408_s20 + $0x8c0] ss:$16 sps:$4 sm:$0xff]   ;;  %v3838_v36 = vld [vmem:[%s4408_s20 + $0x8c8] ss:$16 sps:$4 sm:$0xff]  }
 0x193   : > { %2347 = vmatpush1.bf16.msra.mxu0 %v3742_v37  ;;  %2562 = vmatpush1.bf16.msra.mxu1 %v3745_v38  ;;  %v3843_v37 = vld [vmem:[%s4408_s20 + $0x8e4] ss:$16 sps:$4 sm:$0xff]   ;;  %v3846_v38 = vld [vmem:[%s4408_s20 + $0x8ec] ss:$16 sps:$4 sm:$0xff]  }
 0x194   : > { %2348 = vmatprep.subr.bf16.mxu0 %v3750_v39  ;;  %2563 = vmatprep.subr.bf16.mxu1 %v3753_v40  ;;  %v3841_v39 = vld [vmem:[%s4408_s20 + $0x8e0] ss:$16 sps:$4 sm:$0xff]   ;;  %v3844_v40 = vld [vmem:[%s4408_s20 + $0x8e8] ss:$16 sps:$4 sm:$0xff]  }
 0x197   : > { %2349 = vmatpush1.bf16.msra.mxu0 %v3748_v41  ;;  %2564 = vmatpush1.bf16.msra.mxu1 %v3751_v42  ;;  %v3847_v41 = vld [vmem:[#allocation2 + $0x20] ss:$36 sps:$4 sm:$0xff]   ;;  %v697_v42 = vlaneseq }
 0x198   : > { %2350 = vmatprep.subr.bf16.mxu0 %v3756_v43  ;;  %2565 = vmatprep.subr.bf16.mxu1 %v3759_v44 }
 0x199   : > { %v698_v43 = vshrl.u32 %v697_v42, 7 }
 0x19b   : > { %2351 = vmatpush1.bf16.msra.mxu0 %v3754_v45  ;;  %2566 = vmatpush1.bf16.msra.mxu1 %v3757_v46  ;;  %v699_v44 = vsub.s32 0, %v698_v43  ;;  %v707_v45 = vsub.s32 2, %v698_v43  ;;  %v695_v46 = vld [vmem:[%s329_s9] sm:$0xf] }
 0x19c   : > { %2352 = vmatprep.subr.bf16.mxu0 %v3762_v47  ;;  %2567 = vmatprep.subr.bf16.mxu1 %v3765_v48  ;;  %v703_v47 = vsub.s32 1, %v698_v43  ;;  %v711_v48 = vsub.s32 3, %v698_v43 }
 0x19f   : > { %2353 = vmatpush1.bf16.msra.mxu0 %v3760_v49  ;;  %2568 = vmatpush1.bf16.msra.mxu1 %v3763_v50  ;;  %v700_v49 = vrot.slane %v695_v46, %v699_v44  ;;  %v708_v50 = vrot.slane %v695_v46, %v707_v45 }
 0x1a0   : > { %2354 = vmatprep.subr.bf16.mxu0 %v3768_v51  ;;  %2569 = vmatprep.subr.bf16.mxu1 %v3771_v52  ;;  %v704_v51 = vrot.slane %v695_v46, %v703_v47  ;;  %v712_v52 = vrot.slane %v695_v46, %v711_v48 }
 0x1a3   : > { %2355 = vmatpush1.bf16.msra.mxu0 %v3766_v53  ;;  %2570 = vmatpush1.bf16.msra.mxu1 %v3769_v54 }
 0x1a4   : > { %2356 = vmatprep.subr.bf16.mxu0 %v3774_v55  ;;  %2571 = vmatprep.subr.bf16.mxu1 %v3777_v56 }
 0x1a7   : > { %2357 = vmatpush1.bf16.msra.mxu0 %v3772_v57  ;;  %2572 = vmatpush1.bf16.msra.mxu1 %v3775_v58 }
 0x1a8   : > { %2358 = vmatprep.subr.bf16.mxu0 %v3780_v59  ;;  %2573 = vmatprep.subr.bf16.mxu1 %v3783_v60 }
 0x1ab   : > { %2359 = vmatpush1.bf16.msra.mxu0 %v3778_v61  ;;  %2574 = vmatpush1.bf16.msra.mxu1 %v3781_v62 }
 0x1ac   : > { %2360 = vmatprep.subr.bf16.mxu0 %v3786_v63  ;;  %2575 = vmatprep.subr.bf16.mxu1 %v3789_v0 }
 0x1af   : > { %2361 = vmatpush1.bf16.msra.mxu0 %v3784_v1  ;;  %2576 = vmatpush1.bf16.msra.mxu1 %v3787_v2 }
 0x1b0   : > { %2362 = vmatprep.subr.bf16.mxu0 %v3792_v3  ;;  %2577 = vmatprep.subr.bf16.mxu1 %v3795_v4 }
 0x1b3   : > { %2363 = vmatpush1.bf16.msra.mxu0 %v3790_v5  ;;  %2578 = vmatpush1.bf16.msra.mxu1 %v3793_v6 }
 0x1b4   : > { %2375 = vmatprep.subr.bf16.mxu0 %v3801_v7  ;;  %2590 = vmatprep.subr.bf16.mxu1 %v3804_v8 }
 0x1b6   : > { %2365 = vmatmul.mubr.bf16.vlgmr.msra.gmra.mrb[0].mxu0 %v3796_v9  ;;  %2580 = vmatmul.mubr.bf16.vlgmr.msra.gmra.mrb[0].mxu1 %v3796_v9 }
 0x1b7   : > { %2376 = vmatpush1.bf16.msra.mxu0 %v3799_v10  ;;  %2591 = vmatpush1.bf16.msra.mxu1 %v3802_v11 }
 0x1b8   : > { %2377 = vmatprep.subr.bf16.mxu0 %v3807_v12  ;;  %2592 = vmatprep.subr.bf16.mxu1 %v3810_v13  ;;  %v2681_v13 = vld [vmem:[%s338_s17] sm:$0xf] }
 0x1b9   : > { %2407 = vmatprep.mubr.bf16.mxu0 %v4114_v18  ;;  %2622 = vmatprep.mubr.bf16.mxu1 %v4114_v18  ;;  %v2694_v18 = vrot.slane %v2681_v13, %v707_v45 }
 0x1bb   : > { %2378 = vmatpush1.bf16.msra.mxu0 %v3805_v14  ;;  %2593 = vmatpush1.bf16.msra.mxu1 %v3808_v15  ;;  %v2711_v14 = vld [vmem:[%s347_s16] sm:$0xf] }
 0x1bc   : > { %2379 = vmatprep.subr.bf16.mxu0 %v3813_v16  ;;  %2594 = vmatprep.subr.bf16.mxu1 %v3816_v17  ;;  %v2686_v16 = vrot.slane %v2681_v13, %v699_v44  ;;  %v2716_v17 = vrot.slane %v2711_v14, %v699_v44 }
 0x1bf   : > { %2380 = vmatpush1.bf16.msra.mxu0 %v3811_v19  ;;  %2595 = vmatpush1.bf16.msra.mxu1 %v3814_v20  ;;  %v2690_v19 = vrot.slane %v2681_v13, %v703_v47 }
 0x1c0   : > { %2381 = vmatprep.subr.bf16.mxu0 %v3819_v21  ;;  %2596 = vmatprep.subr.bf16.mxu1 %v3822_v22  ;;  %v2724_v22 = vrot.slane %v2711_v14, %v707_v45 }
 0x1c3   : > { %2382 = vmatpush1.bf16.msra.mxu0 %v3817_v23  ;;  %2597 = vmatpush1.bf16.msra.mxu1 %v3820_v24  ;;  %v2720_v23 = vrot.slane %v2711_v14, %v703_v47  ;;  %v4737_v24 = vrot.slane %v2681_v13, %v711_v48 }
 0x1c4   : > { %2383 = vmatprep.subr.bf16.mxu0 %v3825_v25  ;;  %2598 = vmatprep.subr.bf16.mxu1 %v3828_v26 }
 0x1c7   : > { %2384 = vmatpush1.bf16.msra.mxu0 %v3823_v27  ;;  %2599 = vmatpush1.bf16.msra.mxu1 %v3826_v28  ;;  %v2728_v27 = vrot.slane %v2711_v14, %v711_v48 }
 0x1c8   : > { %2385 = vmatprep.subr.bf16.mxu0 %v3831_v29  ;;  %2600 = vmatprep.subr.bf16.mxu1 %v3834_v30 }
 0x1cb   : > { %2386 = vmatpush1.bf16.msra.mxu0 %v3829_v31  ;;  %2601 = vmatpush1.bf16.msra.mxu1 %v3832_v32 }
 0x1cc   : > { %2387 = vmatprep.subr.bf16.mxu0 %v3837_v33  ;;  %2602 = vmatprep.subr.bf16.mxu1 %v3840_v34 }
 0x1cf   : > { %2388 = vmatpush1.bf16.msra.mxu0 %v3835_v35  ;;  %2603 = vmatpush1.bf16.msra.mxu1 %v3838_v36 }
 0x1d0   : > { %2389 = vmatprep.subr.bf16.mxu0 %v3843_v37  ;;  %2604 = vmatprep.subr.bf16.mxu1 %v3846_v38 }
 0x1d3   : > { %2390 = vmatpush1.bf16.msra.mxu0 %v3841_v39  ;;  %2605 = vmatpush1.bf16.msra.mxu1 %v3844_v40 }
 0x1d6   : > { %2408 = vmatmul.mubr.bf16.vlgmr.msra.gmra.mrb[0].mxu0 %v3847_v41  ;;  %2623 = vmatmul.mubr.bf16.vlgmr.msra.gmra.mrb[0].mxu1 %v3847_v41 }
 0x2a9   : > { %v2409_v53 = vpop.f32.mrb[0].mxu0  ;;  %v2624_v54 = vpop.f32.mrb[0].mxu1 }
 0x2aa   : > { %v3264_v55 = vadd.f32 %v2409_v53, %v700_v49  ;;  %v4713_v56 = vadd.f32 %v2624_v54, %v708_v50  ;;  %v2411_v57 = vpop.f32.mrb[1].mxu0  ;;  %v2626_v58 = vpop.f32.mrb[1].mxu1 }
 0x2ab   : > { %v4715_v59 = vadd.f32 %v2411_v57, %v704_v51  ;;  %v4717_v60 = vadd.f32 %v2626_v58, %v712_v52  ;;  %v2413_v61 = vpop.f32.mrb[2].mxu0  ;;  %v2628_v62 = vpop.f32.mrb[2].mxu1 }
 0x2ac   : > { %v2641_v63 = vmul.f32 1.442695, %v3264_v55  ;;  %v2645_v0 = vmul.f32 1.442695, %v4713_v56  ;;  %v4722_v3 = vadd.f32 %v2413_v61, %v700_v49  ;;  %v4724_v4 = vadd.f32 %v2628_v62, %v708_v50  ;;  %v2415_v5 = vpop.f32.mrb[3].mxu0  ;;  %v2630_v6 = vpop.f32.mrb[3].mxu1 }
 0x2ad   : > { %v2643_v1 = vmul.f32 1.442695, %v4715_v59  ;;  %v2647_v2 = vmul.f32 1.442695, %v4717_v60  ;;  %v4726_v7 = vadd.f32 %v2415_v5, %v704_v51  ;;  %v4728_v8 = vadd.f32 %v2630_v6, %v712_v52 }
 0x2ae   : > { %3848 = vpow2.f32 %v2641_v63  ;;  %v2649_v9 = vmul.f32 1.442695, %v4722_v3  ;;  %v2653_v10 = vmul.f32 1.442695, %v4724_v4  ;;  %vm2633_vm0 = vcmp.gt.f32.partialorder %v3264_v55, 0.0 }
 0x2af   : > { %3850 = vpow2.f32 %v2645_v0  ;;  %v2651_v11 = vmul.f32 1.442695, %v4726_v7  ;;  %v2655_v12 = vmul.f32 1.442695, %v4728_v8  ;;  %vm2635_vm1 = vcmp.gt.f32.partialorder %v4713_v56, 0.0 }
 0x2b0   : > { %3852 = vpow2.f32 %v2643_v1  ;;  %vm2634_vm2 = vcmp.gt.f32.partialorder %v4715_v59, 0.0  ;;  %vm2636_vm3 = vcmp.gt.f32.partialorder %v4717_v60, 0.0  ;;  %vm2637_vm4 = vcmp.gt.f32.partialorder %v4722_v3, 0.0 }
 0x2b1   : > { %3854 = vpow2.f32 %v2647_v2  ;;  %vm2639_vm5 = vcmp.gt.f32.partialorder %v4724_v4, 0.0  ;;  %vm2638_vm6 = vcmp.gt.f32.partialorder %v4726_v7, 0.0  ;;  %vm2640_vm7 = vcmp.gt.f32.partialorder %v4728_v8, 0.0 }
 0x2b2   : > { %3856 = vpow2.f32 %v2649_v9 }
 0x2b3   : > { %3858 = vpow2.f32 %v2653_v10 }
 0x2b4   : > { %3860 = vpow2.f32 %v2651_v11 }
 0x2b5   : > { %3862 = vpow2.f32 %v2655_v12 }
 0x2b8   : > { %v3849_v15 = vpop.eup %3848 }
 0x2b9   : > { %v3851_v20 = vpop.eup %3850  ;;  %v3246_v21 = vadd.f32 -1.0, %v3849_v15 }
 0x2ba   : > { %v3853_v25 = vpop.eup %3852  ;;  %v3248_v26 = vadd.f32 -1.0, %v3851_v20 }
 0x2bb   : > { %v3855_v28 = vpop.eup %3854  ;;  %v2665_v29 = vmul.f32 1.6732632, %v3246_v21  ;;  %v3247_v30 = vadd.f32 -1.0, %v3853_v25 }
 0x2bc   : > { %v3857_v31 = vpop.eup %3856  ;;  %v2667_v32 = vmul.f32 1.6732632, %v3248_v26  ;;  %v3249_v33 = vadd.f32 -1.0, %v3855_v28 }
 0x2bd   : > { %v3859_v34 = vpop.eup %3858  ;;  %v2673_v35 = vsel %vm2633_vm0, %v3264_v55, %v2665_v29  ;;  %v2666_v36 = vmul.f32 1.6732632, %v3247_v30  ;;  %v3250_v37 = vadd.f32 -1.0, %v3857_v31 }
 0x2be   : > { %v3861_v38 = vpop.eup %3860  ;;  %v2703_v39 = vmul.f32 %v2686_v16, %v2673_v35  ;;  %v2675_v40 = vsel %vm2635_vm1, %v4713_v56, %v2667_v32  ;;  %v2668_v41 = vmul.f32 1.6732632, %v3249_v33  ;;  %v3252_v42 = vadd.f32 -1.0, %v3859_v34 }
 0x2bf   : > { %v3863_v43 = vpop.eup %3862  ;;  %v2705_v44 = vmul.f32 %v2694_v18, %v2675_v40  ;;  %v2674_v45 = vsel %vm2634_vm2, %v4715_v59, %v2666_v36  ;;  %v2669_v46 = vmul.f32 1.6732632, %v3250_v37  ;;  %v3251_v47 = vadd.f32 -1.0, %v3861_v38 }
 0x2c0   : > { %v2733_v48 = vadd.f32 %v2716_v17, %v2703_v39  ;;  %v2704_v49 = vmul.f32 %v2690_v19, %v2674_v45  ;;  %v2676_v50 = vsel %vm2636_vm3, %v4717_v60, %v2668_v41  ;;  %v2671_v51 = vmul.f32 1.6732632, %v3252_v42 }
 0x2c1   : > { %v2735_v52 = vadd.f32 %v2724_v22, %v2705_v44  ;;  %v2706_v53 = vmul.f32 %v4737_v24, %v2676_v50  ;;  %v2677_v54 = vsel %vm2637_vm4, %v4722_v3, %v2669_v46  ;;  %v2670_v55 = vmul.f32 1.6732632, %v3251_v47 }
 0x2c2   : > { %2741 = vst [vmem:[%s388_s30] sm:$0xff] %v2733_v48  ;;  %v2734_v56 = vadd.f32 %v2720_v23, %v2704_v49  ;;  %v2707_v57 = vmul.f32 %v2686_v16, %v2677_v54  ;;  %v2679_v58 = vsel %vm2639_vm5, %v4724_v4, %v2671_v51  ;;  %v3253_v59 = vadd.f32 -1.0, %v3863_v43 }
 0x2c3   : > { %2743 = vst [vmem:[%s388_s30 + $0x10] sm:$0xff] %v2735_v52  ;;  %v2736_v60 = vadd.f32 %v2728_v27, %v2706_v53  ;;  %v2709_v61 = vmul.f32 %v2694_v18, %v2679_v58  ;;  %v2678_v62 = vsel %vm2638_vm6, %v4726_v7, %v2670_v55 }
 0x2c4   : > { %2742 = vst [vmem:[%s388_s30 + $0x8] sm:$0xff] %v2734_v56  ;;  %v2737_v63 = vadd.f32 %v2716_v17, %v2707_v57  ;;  %v2708_v0 = vmul.f32 %v2690_v19, %v2678_v62  ;;  %v2672_v1 = vmul.f32 1.6732632, %v3253_v59 }
 0x2c5   : > { %2744 = vst [vmem:[%s388_s30 + $0x18] sm:$0xff] %v2736_v60  ;;  %v2739_v2 = vadd.f32 %v2724_v22, %v2709_v61 }
 0x2c6   : > { %2745 = vst [vmem:[%s388_s30 + $0x20] sm:$0xff] %v2737_v63  ;;  %v2738_v3 = vadd.f32 %v2720_v23, %v2708_v0  ;;  %v2680_v4 = vsel %vm2640_vm7, %v4728_v8, %v2672_v1 }
 0x2c7   : > { %2747 = vst [vmem:[%s388_s30 + $0x30] sm:$0xff] %v2739_v2  ;;  %v2710_v5 = vmul.f32 %v4737_v24, %v2680_v4 }
 0x2c8   : > { %2746 = vst [vmem:[%s388_s30 + $0x28] sm:$0xff] %v2738_v3 }
 0x2c9   : > { %v2740_v6 = vadd.f32 %v2728_v27, %v2710_v5 }
 0x2cb   : > { %2748 = vst [vmem:[%s388_s30 + $0x38] sm:$0xff] %v2740_v6 }
 0x2cc   : > { %4025 = shalt.err (!%p4022_p10)
}
 0x2cd   : > { %s4026_s25 = scalar_lea.hbm %s4775_s8, 1024  ;;  %s4030_s10 = scalar_lea.hbm %s4828_s5, 9216 }
 0x2ce   : > { %p4027_p4 = scmp.ne.s32.totalorder %s4775_s8, %s4026_s25  ;;  %p4031_p12 = scmp.lt.u32.totalorder %s4775_s8, %s4828_s5 }
 0x2cf   : > { %p4032_p6 = scmp.lt.u32.totalorder %s4030_s10, %s4026_s25  ;;  %p4034_p9 = scmp.lt.u32.totalorder %s4026_s25, %s4775_s8 }
 0x2d0   : > { %p4028_p5 = pnand %p4027_p4, %p4869_p1 }
 0x2d1   : > { %p4033_p2 = por %p4032_p6, %p4031_p12 }
 0x2d2   : > { %p4029_p3 = pneg %p4028_p5 }
 0x2d3   : > { %p4035_p0 = por %p4034_p9, %p4033_p2 }
 0x2d5   : > { %p4036_p13 = pnand %p4035_p0, %p4029_p3 }
 0x2d7   : > { %4039 = shalt.err (!%p4036_p13)
}
 0x2d8   : > { %s4116_s22 = smov 512   ;;  %s4117_s9 = smov 4608  }
 0x2d9   : > { %s4118_s28 = smov 32  }
 0x2da   : > { %3318 = dma.vmem_to_hbm [thread:$0]  (%p4869_p1), %s4769_s26, 1024, %s4775_s8, %s2750_s21, %s4116_s22, %s4117_s9, %s4118_s28  }
 0x2db PF: > { %s4870_s17 = sld [smem:[#allocation16_spill]]  ;;  %s4871_s16 = sld [smem:[#allocation21_spill]] }
 0x2dc   : > { %p3344_p7 = scmp.ge.s32.totalorder %s4102_s23, 2 }
 0x2e1   : > { %s2781_s18 = sand.u32 1, %s4870_s17   ;;  %p4872_p8 = scmp.ne.s32.totalorder %s4871_s16, 0 }
 0x2e2   : > { %s2782_s30 = scalar_lea.sflag [#allocation4], %s2781_s18 }
 0x2e3   : > { %p3338_p11 = pnand %p3344_p7, %p4872_p8 }
 0x2e5   : > { %4077 = dma.done.wait (!%p3338_p11), %s2782_s30, 1024  }
 0x2e6   : > { %4079 = vsyncadd (!%p3338_p11), %s2782_s30, 4294966272  ;;  %s25_s23 = sadd.s32 1, %s4102_s23   ;;  %s4873_s11 = sld [smem:[#allocation17_spill]] }
 0x2e7   : > { %p22_p10 = scmp.ge.s32.totalorder %s25_s23, 11   ;;  %s4874_s20 = sld [smem:[#allocation20_spill]] }
 0x2e8   : > { %s4875_s21 = sld [smem:[#allocation18_spill]]  ;;  %s4876_s22 = sld [smem:[#allocation19_spill]] }
 0x2e9   : > { %s4877_s18 = smov %s4086_s19  ;;  %24 = sbr.rel (!%p22_p10) target bundleno = 12 (0xc), region = 126 }
 0x2ec   : > { %s4878_s19 = smov %s4873_s11 }
 0x2f0   :  { %2787 = vsyncpa [#allocation3], 1 }
 0x2f1   :  { %2789 = vsyncpa [#allocation3 + $0x1], 1 }
 0x2f2   :  { %2790 = vsyncpa [#allocation6], 1 }
 0x2f3   :  { %2792 = vsyncpa [#allocation6 + $0x1], 1 }
 0x2f4   :  { %2793 = vsyncpa [#allocation9], 1 }
 0x2f5   :  { %2795 = vsyncpa [#allocation9 + $0x1], 1 }
 0x2f6   :  { %2796 = vsyncpa [#allocation4], 1 }
 0x2f7   :  { %2798 = vsyncpa [#allocation4 + $0x1], 1 }

</bundles_post_ra>
